<compile_context>
chip_gen: v7x
topology: tpu7x:2x2x1
jax: 0.10.0
libtpu: 0.0.40
codegen_flags: <defaults>
</compile_context>

<pallas_src>
import functools

import jax
import jax.numpy as jnp
from jax.experimental import pallas as pl
from jax.experimental.pallas import tpu as pltpu

HID = 256        # hidden width of phi / rho (fixed by the module)
LANE = 128
SUBLANE = 8


def _round_up(x, m):
    return ((x + m - 1) // m) * m


def _vmem_capacity_bytes():
    """Physical VMEM of the attached TPU; conservative v7x default if unknown."""
    try:
        cap = getattr(pltpu.get_tpu_info(), "vmem_capacity_bytes", None)
        if cap:
            return int(cap)
    except Exception:
        pass
    return 64 * 1024 * 1024


def deepset_kernel(x_ref, m_ref,
                   w1_ref, b1_ref, w2_ref, b2_ref, w3_ref, b3_ref,
                   r1_ref, c1_ref, r2_ref, c2_ref, r3_ref, c3_ref,
                   out_ref, *, tile_b, n):
    f32 = jnp.float32
    bf16 = jnp.bfloat16

    x = x_ref[...]                                 # [tile_b*n, dim_in_pad] bf16
    m = m_ref[...]                                 # [tile_b, n]            f32 (0/1)

    # ---- phi layers 1-2 on every set element (bf16 MXU, f32 accumulation) ------
    h = jnp.dot(x, w1_ref[...], preferred_element_type=f32) + b1_ref[...]
    h = jnp.maximum(h.astype(bf16), 0)             # ReLU on bf16 -> next bf16 matmul
    h = jnp.dot(h, w2_ref[...], preferred_element_type=f32) + b2_ref[...]
    h = jnp.maximum(h, 0.0)                        # keep f32: feeds the f32 pooling

    # ---- masked pooling, commuted past phi's bias-only third layer -------------
    #   sum_i m_i*(h_i @ W3 + b3) == (sum_i m_i*h_i) @ W3 + (sum_i m_i)*b3
    s_pre = jnp.sum(h.reshape(tile_b, n, HID) * m[..., None], axis=1)  # [tile_b, HID]
    counts = jnp.sum(m, axis=1, keepdims=True)                         # [tile_b, 1]
    s = (jnp.dot(s_pre.astype(bf16), w3_ref[...], preferred_element_type=f32)
         + counts * b3_ref[...])

    # ---- rho MLP on the pooled representation (M = tile_b) ---------------------
    g = jnp.dot(s.astype(bf16), r1_ref[...], preferred_element_type=f32) + c1_ref[...]
    g = jnp.maximum(g.astype(bf16), 0)
    g = jnp.dot(g, r2_ref[...], preferred_element_type=f32) + c2_ref[...]
    g = jnp.maximum(g.astype(bf16), 0)
    g = jnp.dot(g, r3_ref[...], preferred_element_type=f32) + c3_ref[...]

    # batches with an empty mask (including batch-padding rows) produce exact zeros
    out_ref[...] = jnp.where(counts > 0.0, g, 0.0).astype(out_ref.dtype)


def deepset_forward(x, mask, params, tile_b=None):
    """x: [B, N, dim_in] float32, mask: [B, N] (0/1). Returns [B, dim_out] float32."""
    B, N, dim_in = x.shape
    dim_out = params["r3"].shape[1]
    dim_in_pad = _round_up(dim_in, SUBLANE)
    dim_out_pad = _round_up(max(dim_out, LANE), LANE)
    # pad the set dim so the in-kernel [rows, HID] -> [tile_b, n, HID] reshape never
    # splits an (8, 128) sublane tile (free metadata reshape)
    n_pad = _round_up(max(N, SUBLANE), SUBLANE)

    vmem_cap = _vmem_capacity_bytes()

    # ---- batch tile: generation-aware rows = tile_b * n_pad --------------------
    if tile_b is None:
        # live f32 phi activations (~3x [rows, HID]) + double-buffered bf16 x
        bytes_per_row = 3 * HID * 4 + 2 * dim_in_pad * 2
        rows_budget = max(8 << 20, vmem_cap // 2) // bytes_per_row
        rows_target = 8192 if vmem_cap >= (96 << 20) else 4096      # v5e/v6e vs v7x
        rows_target = max(n_pad, min(rows_target, rows_budget))
        tile_b = max(1, min(B, rows_target // n_pad))
        # keep >= 4 grid steps when the batch allows it (2 TCs on v7x + pipelining)
        if B >= 4 * SUBLANE:
            tile_b = min(tile_b, B // 4)
    if tile_b >= B:
        tile_b = B                                                   # single-tile: full dims
    else:
        tile_b = max(SUBLANE, (tile_b // SUBLANE) * SUBLANE)         # (8,128) legality
        tile_b = min(tile_b, B)
    # TODO(synk): for very large N (one batch element alone exceeding the VMEM budget),
    # split the set dimension onto a second "arbitrary" grid axis with a VMEM scratch
    # accumulator for the pooled sum instead of growing rows.

    B_pad = _round_up(B, tile_b)
    grid = (B_pad // tile_b,)
    rows = tile_b * n_pad

    # ---- pad / flatten / cast inputs -------------------------------------------
    xf = jnp.pad(x.astype(jnp.float32),
                 ((0, B_pad - B), (0, n_pad - N), (0, dim_in_pad - dim_in)))
    x_flat = xf.reshape(B_pad * n_pad, dim_in_pad).astype(jnp.bfloat16)
    mask_f = jnp.pad(mask.astype(jnp.float32), ((0, B_pad - B), (0, n_pad - N)))

    # ---- weights: bf16, w1 K-padded, r3/c3 N-padded to a lane-dense 128 slab ----
    bf16 = jnp.bfloat16
    w1 = jnp.pad(params["w1"], ((0, dim_in_pad - dim_in), (0, 0))).astype(bf16)
    w2 = params["w2"].astype(bf16)
    w3 = params["w3"].astype(bf16)
    r1 = params["r1"].astype(bf16)
    r2 = params["r2"].astype(bf16)
    r3 = jnp.pad(params["r3"], ((0, 0), (0, dim_out_pad - dim_out))).astype(bf16)
    b1, b2, b3 = params["b1"], params["b2"], params["b3"]            # biases stay f32
    c1, c2 = params["c1"], params["c2"]
    c3 = jnp.pad(params["c3"], ((0, 0), (0, dim_out_pad - dim_out)))
    weight_args = (w1, b1, w2, b2, w3, b3, r1, c1, r2, c2, r3, c3)

    # ---- generation-aware VMEM limit --------------------------------------------
    weight_bytes = sum(int(a.size) * a.dtype.itemsize for a in weight_args)
    step_bytes = (2 * rows * dim_in_pad * 2                 # x (bf16, double-buffered)
                  + 2 * tile_b * max(n_pad, LANE) * 4       # mask block
                  + 2 * tile_b * dim_out_pad * 4            # output block
                  + 2 * weight_bytes                        # worst case: double-buffered
                  + 3 * rows * HID * 4)                     # live f32 phi activations
    vmem_limit = int(min(0.9 * vmem_cap, max(32 << 20, 2 * step_bytes)))

    x_spec = pl.BlockSpec((rows, dim_in_pad), lambda b: (b, 0))
    m_spec = pl.BlockSpec((tile_b, n_pad), lambda b: (b, 0))
    out_spec = pl.BlockSpec((tile_b, dim_out_pad), lambda b: (b, 0))
    out_shape = jax.ShapeDtypeStruct((B_pad, dim_out_pad), jnp.float32)
    kernel = functools.partial(deepset_kernel, tile_b=tile_b, n=n_pad)
    cparams = pltpu.CompilerParams(
        dimension_semantics=("parallel",),       # megacore sharding on v7x
        vmem_limit_bytes=vmem_limit)

    def run(single_buffer_weights):
        if single_buffer_weights:
            # constant index_map -> weights never refetched; one VMEM copy, not two
            def resident(a):
                return pl.BlockSpec(a.shape, lambda b: (0, 0),
                                    pipeline_mode=pl.Buffered(buffer_count=1))
        else:
            def resident(a):
                return pl.BlockSpec(a.shape, lambda b: (0, 0))
        return pl.pallas_call(
            kernel,
            out_shape=out_shape,
            grid=grid,
            in_specs=[x_spec, m_spec] + [resident(a) for a in weight_args],
            out_specs=out_spec,
            compiler_params=cparams,
        )(x_flat, mask_f, *weight_args)

    try:
        out_pad = run(True)
    except Exception:
        # pl.Buffered(1) / pipeline_mode unsupported on this jax -> default buffering
        out_pad = run(False)

    return out_pad[:B, :dim_out]


def init_params(key, dim_in, dim_out):
    """Deterministic Linear params (stored as [fan_in, fan_out], i.e. W.T)."""
    shapes = [(dim_in, HID), (HID, HID), (HID, HID),   # phi
              (HID, HID), (HID, HID), (HID, dim_out)]  # rho
    names = ["w1", "w2", "w3", "r1", "r2", "r3"]
    bnames = ["b1", "b2", "b3", "c1", "c2", "c3"]
    keys = jax.random.split(key, 2 * len(shapes))
    params = {}
    for idx, ((fi, fo), wn, bn) in enumerate(zip(shapes, names, bnames)):
        scale = 1.0 / jnp.sqrt(jnp.float32(fi))
        params[wn] = jax.random.uniform(keys[2 * idx], (fi, fo),
                                        jnp.float32, -scale, scale)
        params[bn] = jax.random.uniform(keys[2 * idx + 1], (1, fo),
                                        jnp.float32, -scale, scale)
    return params


def reference_forward(x, mask, p):
    """Pure-JAX f32 reference with the same semantics as the PyTorch module."""
    m = mask.astype(x.dtype)
    h = jnp.maximum(x @ p["w1"] + p["b1"], 0.0)
    h = jnp.maximum(h @ p["w2"] + p["b2"], 0.0)
    h = h @ p["w3"] + p["b3"]
    s = jnp.sum(h * m[..., None], axis=1)
    g = jnp.maximum(s @ p["r1"] + p["c1"], 0.0)
    g = jnp.maximum(g @ p["r2"] + p["c2"], 0.0)
    g = g @ p["r3"] + p["c3"]
    valid = m.sum(axis=1, keepdims=True) > 0
    return jnp.where(valid, g, 0.0)


if __name__ == "__main__":
    B, N, DIM_IN, DIM_OUT = 2, 8, 4, 32

    key = jax.random.PRNGKey(0)
    k_x, k_p = jax.random.split(key)

    x = jax.random.normal(k_x, (B, N, DIM_IN), dtype=jnp.float32)
    # batch 0: 5 valid elements (non-contiguous); batch 1: empty set (exercises the
    # "no valid elements -> zeros" path of the PyTorch module).
    mask = jnp.array([[1, 0, 1, 1, 0, 1, 1, 0],
                      [0, 0, 0, 0, 0, 0, 0, 0]], dtype=jnp.float32)

    params = init_params(k_p, DIM_IN, DIM_OUT)

    out = deepset_forward(x, mask, params)
    out = jax.block_until_ready(out)

    ref = reference_forward(x, mask, params)
    assert out.shape == (B, DIM_OUT)
    # bf16 MXU operands with f32 accumulation vs f32 reference -> loose tolerance
    assert jnp.allclose(out, ref, atol=5e-2, rtol=5e-2), "mismatch vs reference"
    assert jnp.all(out[1] == 0.0), "empty-mask batch must be all zeros"

    print("KERNEL_OK")
</pallas_src>

<mosaic_0001>
module attributes {stable_mosaic.version = 11 : i64} {
  func.func @deepset_kernel(%arg0: i32, %arg1: memref<16x8xbf16, #tpu.memory_space<vmem>>, %arg2: memref<2x8xf32, #tpu.memory_space<vmem>>, %arg3: memref<8x256xbf16, #tpu.memory_space<vmem>>, %arg4: memref<1x256xf32, #tpu.memory_space<vmem>>, %arg5: memref<256x256xbf16, #tpu.memory_space<vmem>>, %arg6: memref<1x256xf32, #tpu.memory_space<vmem>>, %arg7: memref<256x256xbf16, #tpu.memory_space<vmem>>, %arg8: memref<1x256xf32, #tpu.memory_space<vmem>>, %arg9: memref<256x256xbf16, #tpu.memory_space<vmem>>, %arg10: memref<1x256xf32, #tpu.memory_space<vmem>>, %arg11: memref<256x256xbf16, #tpu.memory_space<vmem>>, %arg12: memref<1x256xf32, #tpu.memory_space<vmem>>, %arg13: memref<256x128xbf16, #tpu.memory_space<vmem>>, %arg14: memref<1x128xf32, #tpu.memory_space<vmem>>, %arg15: memref<2x128xf32, #tpu.memory_space<vmem>>) attributes {dimension_semantics = [#tpu.dimension_semantics<parallel>], iteration_bounds = array<i64: 1>, scalar_prefetch = 0 : i64, scratch_operands = 0 : i64, tpu.core_type = #tpu.core_type<tc>, window_params = [{transform_indices = @transform_0, window_bounds = array<i64: 16, 8>}, {transform_indices = @transform_1, window_bounds = array<i64: 2, 8>}, {pipeline_mode = #tpu.pipeline_mode<synchronous>, transform_indices = @transform_2, window_bounds = array<i64: 8, 256>}, {pipeline_mode = #tpu.pipeline_mode<synchronous>, transform_indices = @transform_3, window_bounds = array<i64: 1, 256>}, {pipeline_mode = #tpu.pipeline_mode<synchronous>, transform_indices = @transform_4, window_bounds = array<i64: 256, 256>}, {pipeline_mode = #tpu.pipeline_mode<synchronous>, transform_indices = @transform_5, window_bounds = array<i64: 1, 256>}, {pipeline_mode = #tpu.pipeline_mode<synchronous>, transform_indices = @transform_6, window_bounds = array<i64: 256, 256>}, {pipeline_mode = #tpu.pipeline_mode<synchronous>, transform_indices = @transform_7, window_bounds = array<i64: 1, 256>}, {pipeline_mode = #tpu.pipeline_mode<synchronous>, transform_indices = @transform_8, window_bounds = array<i64: 256, 256>}, {pipeline_mode = #tpu.pipeline_mode<synchronous>, transform_indices = @transform_9, window_bounds = array<i64: 1, 256>}, {pipeline_mode = #tpu.pipeline_mode<synchronous>, transform_indices = @transform_10, window_bounds = array<i64: 256, 256>}, {pipeline_mode = #tpu.pipeline_mode<synchronous>, transform_indices = @transform_11, window_bounds = array<i64: 1, 256>}, {pipeline_mode = #tpu.pipeline_mode<synchronous>, transform_indices = @transform_12, window_bounds = array<i64: 256, 128>}, {pipeline_mode = #tpu.pipeline_mode<synchronous>, transform_indices = @transform_13, window_bounds = array<i64: 1, 128>}, {transform_indices = @transform_14, window_bounds = array<i64: 2, 128>}]} {
    %c0 = arith.constant 0 : index
    %c0_0 = arith.constant 0 : index
    %0 = vector.load %arg1[%c0, %c0_0] : memref<16x8xbf16, #tpu.memory_space<vmem>>, vector<16x8xbf16>
    %c0_1 = arith.constant 0 : index
    %c0_2 = arith.constant 0 : index
    %1 = vector.load %arg2[%c0_1, %c0_2] : memref<2x8xf32, #tpu.memory_space<vmem>>, vector<2x8xf32>
    %c0_3 = arith.constant 0 : index
    %c0_4 = arith.constant 0 : index
    %2 = vector.load %arg3[%c0_3, %c0_4] : memref<8x256xbf16, #tpu.memory_space<vmem>>, vector<8x256xbf16>
    %cst = arith.constant dense<0.000000e+00> : vector<16x256xf32>
    %3 = tpu.matmul %0, %2, %cst {dimension_numbers = #tpu.dot_dimension_numbers<[1], [0], [0], [1], [0, 0, 1, 1], [], []>} : vector<16x8xbf16>, vector<8x256xbf16>, vector<16x256xf32> -> vector<16x256xf32>
    %c0_5 = arith.constant 0 : index
    %c0_6 = arith.constant 0 : index
    %4 = vector.load %arg4[%c0_5, %c0_6] : memref<1x256xf32, #tpu.memory_space<vmem>>, vector<1x256xf32>
    %5 = vector.broadcast %4 : vector<1x256xf32> to vector<16x256xf32>
    %6 = arith.addf %3, %5 : vector<16x256xf32>
    %7 = arith.truncf %6 : vector<16x256xf32> to vector<16x256xbf16>
    %cst_7 = arith.constant 0.000000e+00 : bf16
    %8 = vector.broadcast %cst_7 : bf16 to vector<16x256xbf16>
    %9 = arith.maximumf %7, %8 : vector<16x256xbf16>
    %c0_8 = arith.constant 0 : index
    %c0_9 = arith.constant 0 : index
    %10 = vector.load %arg5[%c0_8, %c0_9] : memref<256x256xbf16, #tpu.memory_space<vmem>>, vector<256x256xbf16>
    %cst_10 = arith.constant dense<0.000000e+00> : vector<16x256xf32>
    %11 = tpu.matmul %9, %10, %cst_10 {dimension_numbers = #tpu.dot_dimension_numbers<[1], [0], [0], [1], [0, 0, 1, 1], [], []>} : vector<16x256xbf16>, vector<256x256xbf16>, vector<16x256xf32> -> vector<16x256xf32>
    %c0_11 = arith.constant 0 : index
    %c0_12 = arith.constant 0 : index
    %12 = vector.load %arg6[%c0_11, %c0_12] : memref<1x256xf32, #tpu.memory_space<vmem>>, vector<1x256xf32>
    %13 = vector.broadcast %12 : vector<1x256xf32> to vector<16x256xf32>
    %14 = arith.addf %11, %13 : vector<16x256xf32>
    %cst_13 = arith.constant 0.000000e+00 : f32
    %15 = vector.broadcast %cst_13 : f32 to vector<16x256xf32>
    %16 = arith.maximumf %14, %15 : vector<16x256xf32>
    %17 = vector.shape_cast %16 : vector<16x256xf32> to vector<2x8x256xf32>
    %18 = vector.shape_cast %1 : vector<2x8xf32> to vector<2x8x1xf32>
    %19 = vector.broadcast %18 : vector<2x8x1xf32> to vector<2x8x256xf32>
    %20 = arith.mulf %17, %19 : vector<2x8x256xf32>
    %cst_14 = arith.constant dense<0.000000e+00> : vector<2x256xf32>
    %21 = vector.multi_reduction <add>, %20, %cst_14 [1] : vector<2x8x256xf32> to vector<2x256xf32>
    %cst_15 = arith.constant dense<0.000000e+00> : vector<2xf32>
    %22 = vector.multi_reduction <add>, %1, %cst_15 [1] : vector<2x8xf32> to vector<2xf32>
    %23 = vector.shape_cast %22 : vector<2xf32> to vector<2x1xf32>
    %24 = arith.truncf %21 : vector<2x256xf32> to vector<2x256xbf16>
    %c0_16 = arith.constant 0 : index
    %c0_17 = arith.constant 0 : index
    %25 = vector.load %arg7[%c0_16, %c0_17] : memref<256x256xbf16, #tpu.memory_space<vmem>>, vector<256x256xbf16>
    %cst_18 = arith.constant dense<0.000000e+00> : vector<2x256xf32>
    %26 = tpu.matmul %24, %25, %cst_18 {dimension_numbers = #tpu.dot_dimension_numbers<[1], [0], [0], [1], [0, 0, 1, 1], [], []>} : vector<2x256xbf16>, vector<256x256xbf16>, vector<2x256xf32> -> vector<2x256xf32>
    %c0_19 = arith.constant 0 : index
    %c0_20 = arith.constant 0 : index
    %27 = vector.load %arg8[%c0_19, %c0_20] : memref<1x256xf32, #tpu.memory_space<vmem>>, vector<1x256xf32>
    %28 = vector.broadcast %23 : vector<2x1xf32> to vector<2x256xf32>
    %29 = vector.broadcast %27 : vector<1x256xf32> to vector<2x256xf32>
    %30 = arith.mulf %28, %29 : vector<2x256xf32>
    %31 = arith.addf %26, %30 : vector<2x256xf32>
    %32 = arith.truncf %31 : vector<2x256xf32> to vector<2x256xbf16>
    %c0_21 = arith.constant 0 : index
    %c0_22 = arith.constant 0 : index
    %33 = vector.load %arg9[%c0_21, %c0_22] : memref<256x256xbf16, #tpu.memory_space<vmem>>, vector<256x256xbf16>
    %cst_23 = arith.constant dense<0.000000e+00> : vector<2x256xf32>
    %34 = tpu.matmul %32, %33, %cst_23 {dimension_numbers = #tpu.dot_dimension_numbers<[1], [0], [0], [1], [0, 0, 1, 1], [], []>} : vector<2x256xbf16>, vector<256x256xbf16>, vector<2x256xf32> -> vector<2x256xf32>
    %c0_24 = arith.constant 0 : index
    %c0_25 = arith.constant 0 : index
    %35 = vector.load %arg10[%c0_24, %c0_25] : memref<1x256xf32, #tpu.memory_space<vmem>>, vector<1x256xf32>
    %36 = vector.broadcast %35 : vector<1x256xf32> to vector<2x256xf32>
    %37 = arith.addf %34, %36 : vector<2x256xf32>
    %38 = arith.truncf %37 : vector<2x256xf32> to vector<2x256xbf16>
    %cst_26 = arith.constant 0.000000e+00 : bf16
    %39 = vector.broadcast %cst_26 : bf16 to vector<2x256xbf16>
    %40 = arith.maximumf %38, %39 : vector<2x256xbf16>
    %c0_27 = arith.constant 0 : index
    %c0_28 = arith.constant 0 : index
    %41 = vector.load %arg11[%c0_27, %c0_28] : memref<256x256xbf16, #tpu.memory_space<vmem>>, vector<256x256xbf16>
    %cst_29 = arith.constant dense<0.000000e+00> : vector<2x256xf32>
    %42 = tpu.matmul %40, %41, %cst_29 {dimension_numbers = #tpu.dot_dimension_numbers<[1], [0], [0], [1], [0, 0, 1, 1], [], []>} : vector<2x256xbf16>, vector<256x256xbf16>, vector<2x256xf32> -> vector<2x256xf32>
    %c0_30 = arith.constant 0 : index
    %c0_31 = arith.constant 0 : index
    %43 = vector.load %arg12[%c0_30, %c0_31] : memref<1x256xf32, #tpu.memory_space<vmem>>, vector<1x256xf32>
    %44 = vector.broadcast %43 : vector<1x256xf32> to vector<2x256xf32>
    %45 = arith.addf %42, %44 : vector<2x256xf32>
    %46 = arith.truncf %45 : vector<2x256xf32> to vector<2x256xbf16>
    %cst_32 = arith.constant 0.000000e+00 : bf16
    %47 = vector.broadcast %cst_32 : bf16 to vector<2x256xbf16>
    %48 = arith.maximumf %46, %47 : vector<2x256xbf16>
    %c0_33 = arith.constant 0 : index
    %c0_34 = arith.constant 0 : index
    %49 = vector.load %arg13[%c0_33, %c0_34] : memref<256x128xbf16, #tpu.memory_space<vmem>>, vector<256x128xbf16>
    %cst_35 = arith.constant dense<0.000000e+00> : vector<2x128xf32>
    %50 = tpu.matmul %48, %49, %cst_35 {dimension_numbers = #tpu.dot_dimension_numbers<[1], [0], [0], [1], [0, 0, 1, 1], [], []>} : vector<2x256xbf16>, vector<256x128xbf16>, vector<2x128xf32> -> vector<2x128xf32>
    %c0_36 = arith.constant 0 : index
    %c0_37 = arith.constant 0 : index
    %51 = vector.load %arg14[%c0_36, %c0_37] : memref<1x128xf32, #tpu.memory_space<vmem>>, vector<1x128xf32>
    %52 = vector.broadcast %51 : vector<1x128xf32> to vector<2x128xf32>
    %53 = arith.addf %50, %52 : vector<2x128xf32>
    %cst_38 = arith.constant 0.000000e+00 : f32
    %54 = vector.broadcast %cst_38 : f32 to vector<2x1xf32>
    %55 = arith.cmpf ogt, %23, %54 : vector<2x1xf32>
    %cst_39 = arith.constant 0.000000e+00 : f32
    %56 = vector.shape_cast %55 : vector<2x1xi1> to vector<2x1xi1>
    %57 = vector.broadcast %56 : vector<2x1xi1> to vector<2x128xi1>
    %58 = vector.broadcast %cst_39 : f32 to vector<2x128xf32>
    %59 = arith.select %57, %53, %58 : vector<2x128xi1>, vector<2x128xf32>
    %c0_40 = arith.constant 0 : index
    %c0_41 = arith.constant 0 : index
    %60 = vector.load %arg15[%c0_40, %c0_41] : memref<2x128xf32, #tpu.memory_space<vmem>>, vector<2x128xf32>
    tpu.vector_store %arg15[%c0_40, %c0_41], %59 {strides = array<i32>} : memref<2x128xf32, #tpu.memory_space<vmem>>, vector<2x128xf32>,
    return
  }
  func.func @transform_0(%arg0: i32) -> (i32, i32) {
    %c0_i32 = arith.constant 0 : i32
    %c0_i32_0 = arith.constant 0 : i32
    return %arg0, %c0_i32 : i32, i32
  }
  func.func @transform_1(%arg0: i32) -> (i32, i32) {
    %c0_i32 = arith.constant 0 : i32
    %c0_i32_0 = arith.constant 0 : i32
    return %arg0, %c0_i32 : i32, i32
  }
  func.func @transform_2(%arg0: i32) -> (i32, i32) {
    %c0_i32 = arith.constant 0 : i32
    %c0_i32_0 = arith.constant 0 : i32
    %c0_i32_1 = arith.constant 0 : i32
    return %c0_i32, %c0_i32_0 : i32, i32
  }
  func.func @transform_3(%arg0: i32) -> (i32, i32) {
    %c0_i32 = arith.constant 0 : i32
    %c0_i32_0 = arith.constant 0 : i32
    %c0_i32_1 = arith.constant 0 : i32
    return %c0_i32, %c0_i32_0 : i32, i32
  }
  func.func @transform_4(%arg0: i32) -> (i32, i32) {
    %c0_i32 = arith.constant 0 : i32
    %c0_i32_0 = arith.constant 0 : i32
    %c0_i32_1 = arith.constant 0 : i32
    return %c0_i32, %c0_i32_0 : i32, i32
  }
  func.func @transform_5(%arg0: i32) -> (i32, i32) {
    %c0_i32 = arith.constant 0 : i32
    %c0_i32_0 = arith.constant 0 : i32
    %c0_i32_1 = arith.constant 0 : i32
    return %c0_i32, %c0_i32_0 : i32, i32
  }
  func.func @transform_6(%arg0: i32) -> (i32, i32) {
    %c0_i32 = arith.constant 0 : i32
    %c0_i32_0 = arith.constant 0 : i32
    %c0_i32_1 = arith.constant 0 : i32
    return %c0_i32, %c0_i32_0 : i32, i32
  }
  func.func @transform_7(%arg0: i32) -> (i32, i32) {
    %c0_i32 = arith.constant 0 : i32
    %c0_i32_0 = arith.constant 0 : i32
    %c0_i32_1 = arith.constant 0 : i32
    return %c0_i32, %c0_i32_0 : i32, i32
  }
  func.func @transform_8(%arg0: i32) -> (i32, i32) {
    %c0_i32 = arith.constant 0 : i32
    %c0_i32_0 = arith.constant 0 : i32
    %c0_i32_1 = arith.constant 0 : i32
    return %c0_i32, %c0_i32_0 : i32, i32
  }
  func.func @transform_9(%arg0: i32) -> (i32, i32) {
    %c0_i32 = arith.constant 0 : i32
    %c0_i32_0 = arith.constant 0 : i32
    %c0_i32_1 = arith.constant 0 : i32
    return %c0_i32, %c0_i32_0 : i32, i32
  }
  func.func @transform_10(%arg0: i32) -> (i32, i32) {
    %c0_i32 = arith.constant 0 : i32
    %c0_i32_0 = arith.constant 0 : i32
    %c0_i32_1 = arith.constant 0 : i32
    return %c0_i32, %c0_i32_0 : i32, i32
  }
  func.func @transform_11(%arg0: i32) -> (i32, i32) {
    %c0_i32 = arith.constant 0 : i32
    %c0_i32_0 = arith.constant 0 : i32
    %c0_i32_1 = arith.constant 0 : i32
    return %c0_i32, %c0_i32_0 : i32, i32
  }
  func.func @transform_12(%arg0: i32) -> (i32, i32) {
    %c0_i32 = arith.constant 0 : i32
    %c0_i32_0 = arith.constant 0 : i32
    %c0_i32_1 = arith.constant 0 : i32
    return %c0_i32, %c0_i32_0 : i32, i32
  }
  func.func @transform_13(%arg0: i32) -> (i32, i32) {
    %c0_i32 = arith.constant 0 : i32
    %c0_i32_0 = arith.constant 0 : i32
    %c0_i32_1 = arith.constant 0 : i32
    return %c0_i32, %c0_i32_0 : i32, i32
  }
  func.func @transform_14(%arg0: i32) -> (i32, i32) {
    %c0_i32 = arith.constant 0 : i32
    %c0_i32_0 = arith.constant 0 : i32
    return %arg0, %c0_i32 : i32, i32
  }
}

module attributes {stable_mosaic.version = 11 : i64} {
  func.func @deepset_kernel(%arg0: i32, %arg1: memref<16x8xbf16, #tpu.memory_space<vmem>>, %arg2: memref<2x8xf32, #tpu.memory_space<vmem>>, %arg3: memref<8x256xbf16, #tpu.memory_space<vmem>>, %arg4: memref<1x256xf32, #tpu.memory_space<vmem>>, %arg5: memref<256x256xbf16, #tpu.memory_space<vmem>>, %arg6: memref<1x256xf32, #tpu.memory_space<vmem>>, %arg7: memref<256x256xbf16, #tpu.memory_space<vmem>>, %arg8: memref<1x256xf32, #tpu.memory_space<vmem>>, %arg9: memref<256x256xbf16, #tpu.memory_space<vmem>>, %arg10: memref<1x256xf32, #tpu.memory_space<vmem>>, %arg11: memref<256x256xbf16, #tpu.memory_space<vmem>>, %arg12: memref<1x256xf32, #tpu.memory_space<vmem>>, %arg13: memref<256x128xbf16, #tpu.memory_space<vmem>>, %arg14: memref<1x128xf32, #tpu.memory_space<vmem>>, %arg15: memref<2x128xf32, #tpu.memory_space<vmem>>) attributes {dimension_semantics = [#tpu.dimension_semantics<parallel>], iteration_bounds = array<i64: 1>, scalar_prefetch = 0 : i64, scratch_operands = 0 : i64, tpu.core_type = #tpu.core_type<tc>, window_params = [{transform_indices = @transform_0, window_bounds = array<i64: 16, 8>}, {transform_indices = @transform_1, window_bounds = array<i64: 2, 8>}, {pipeline_mode = #tpu.pipeline_mode<synchronous>, transform_indices = @transform_2, window_bounds = array<i64: 8, 256>}, {pipeline_mode = #tpu.pipeline_mode<synchronous>, transform_indices = @transform_3, window_bounds = array<i64: 1, 256>}, {pipeline_mode = #tpu.pipeline_mode<synchronous>, transform_indices = @transform_4, window_bounds = array<i64: 256, 256>}, {pipeline_mode = #tpu.pipeline_mode<synchronous>, transform_indices = @transform_5, window_bounds = array<i64: 1, 256>}, {pipeline_mode = #tpu.pipeline_mode<synchronous>, transform_indices = @transform_6, window_bounds = array<i64: 256, 256>}, {pipeline_mode = #tpu.pipeline_mode<synchronous>, transform_indices = @transform_7, window_bounds = array<i64: 1, 256>}, {pipeline_mode = #tpu.pipeline_mode<synchronous>, transform_indices = @transform_8, window_bounds = array<i64: 256, 256>}, {pipeline_mode = #tpu.pipeline_mode<synchronous>, transform_indices = @transform_9, window_bounds = array<i64: 1, 256>}, {pipeline_mode = #tpu.pipeline_mode<synchronous>, transform_indices = @transform_10, window_bounds = array<i64: 256, 256>}, {pipeline_mode = #tpu.pipeline_mode<synchronous>, transform_indices = @transform_11, window_bounds = array<i64: 1, 256>}, {pipeline_mode = #tpu.pipeline_mode<synchronous>, transform_indices = @transform_12, window_bounds = array<i64: 256, 128>}, {pipeline_mode = #tpu.pipeline_mode<synchronous>, transform_indices = @transform_13, window_bounds = array<i64: 1, 128>}, {transform_indices = @transform_14, window_bounds = array<i64: 2, 128>}]} {
    %c0 = arith.constant 0 : index
    %c0_0 = arith.constant 0 : index
    %0 = vector.load %arg1[%c0, %c0_0] : memref<16x8xbf16, #tpu.memory_space<vmem>>, vector<16x8xbf16>
    %c0_1 = arith.constant 0 : index
    %c0_2 = arith.constant 0 : index
    %1 = vector.load %arg2[%c0_1, %c0_2] : memref<2x8xf32, #tpu.memory_space<vmem>>, vector<2x8xf32>
    %c0_3 = arith.constant 0 : index
    %c0_4 = arith.constant 0 : index
    %2 = vector.load %arg3[%c0_3, %c0_4] : memref<8x256xbf16, #tpu.memory_space<vmem>>, vector<8x256xbf16>
    %cst = arith.constant dense<0.000000e+00> : vector<16x256xf32>
    %3 = tpu.matmul %0, %2, %cst {dimension_numbers = #tpu.dot_dimension_numbers<[1], [0], [0], [1], [0, 0, 1, 1], [], []>} : vector<16x8xbf16>, vector<8x256xbf16>, vector<16x256xf32> -> vector<16x256xf32>
    %c0_5 = arith.constant 0 : index
    %c0_6 = arith.constant 0 : index
    %4 = vector.load %arg4[%c0_5, %c0_6] : memref<1x256xf32, #tpu.memory_space<vmem>>, vector<1x256xf32>
    %5 = vector.broadcast %4 : vector<1x256xf32> to vector<16x256xf32>
    %6 = arith.addf %3, %5 : vector<16x256xf32>
    %7 = arith.truncf %6 : vector<16x256xf32> to vector<16x256xbf16>
    %cst_7 = arith.constant 0.000000e+00 : bf16
    %8 = vector.broadcast %cst_7 : bf16 to vector<16x256xbf16>
    %9 = arith.maximumf %7, %8 : vector<16x256xbf16>
    %c0_8 = arith.constant 0 : index
    %c0_9 = arith.constant 0 : index
    %10 = vector.load %arg5[%c0_8, %c0_9] : memref<256x256xbf16, #tpu.memory_space<vmem>>, vector<256x256xbf16>
    %cst_10 = arith.constant dense<0.000000e+00> : vector<16x256xf32>
    %11 = tpu.matmul %9, %10, %cst_10 {dimension_numbers = #tpu.dot_dimension_numbers<[1], [0], [0], [1], [0, 0, 1, 1], [], []>} : vector<16x256xbf16>, vector<256x256xbf16>, vector<16x256xf32> -> vector<16x256xf32>
    %c0_11 = arith.constant 0 : index
    %c0_12 = arith.constant 0 : index
    %12 = vector.load %arg6[%c0_11, %c0_12] : memref<1x256xf32, #tpu.memory_space<vmem>>, vector<1x256xf32>
    %13 = vector.broadcast %12 : vector<1x256xf32> to vector<16x256xf32>
    %14 = arith.addf %11, %13 : vector<16x256xf32>
    %cst_13 = arith.constant 0.000000e+00 : f32
    %15 = vector.broadcast %cst_13 : f32 to vector<16x256xf32>
    %16 = arith.maximumf %14, %15 : vector<16x256xf32>
    %17 = vector.shape_cast %16 : vector<16x256xf32> to vector<2x8x256xf32>
    %18 = vector.shape_cast %1 : vector<2x8xf32> to vector<2x8x1xf32>
    %19 = vector.broadcast %18 : vector<2x8x1xf32> to vector<2x8x256xf32>
    %20 = arith.mulf %17, %19 : vector<2x8x256xf32>
    %cst_14 = arith.constant dense<0.000000e+00> : vector<2x256xf32>
    %21 = vector.multi_reduction <add>, %20, %cst_14 [1] : vector<2x8x256xf32> to vector<2x256xf32>
    %cst_15 = arith.constant dense<0.000000e+00> : vector<2xf32>
    %22 = vector.multi_reduction <add>, %1, %cst_15 [1] : vector<2x8xf32> to vector<2xf32>
    %23 = vector.shape_cast %22 : vector<2xf32> to vector<2x1xf32>
    %24 = arith.truncf %21 : vector<2x256xf32> to vector<2x256xbf16>
    %c0_16 = arith.constant 0 : index
    %c0_17 = arith.constant 0 : index
    %25 = vector.load %arg7[%c0_16, %c0_17] : memref<256x256xbf16, #tpu.memory_space<vmem>>, vector<256x256xbf16>
    %cst_18 = arith.constant dense<0.000000e+00> : vector<2x256xf32>
    %26 = tpu.matmul %24, %25, %cst_18 {dimension_numbers = #tpu.dot_dimension_numbers<[1], [0], [0], [1], [0, 0, 1, 1], [], []>} : vector<2x256xbf16>, vector<256x256xbf16>, vector<2x256xf32> -> vector<2x256xf32>
    %c0_19 = arith.constant 0 : index
    %c0_20 = arith.constant 0 : index
    %27 = vector.load %arg8[%c0_19, %c0_20] : memref<1x256xf32, #tpu.memory_space<vmem>>, vector<1x256xf32>
    %28 = vector.broadcast %23 : vector<2x1xf32> to vector<2x256xf32>
    %29 = vector.broadcast %27 : vector<1x256xf32> to vector<2x256xf32>
    %30 = arith.mulf %28, %29 : vector<2x256xf32>
    %31 = arith.addf %26, %30 : vector<2x256xf32>
    %32 = arith.truncf %31 : vector<2x256xf32> to vector<2x256xbf16>
    %c0_21 = arith.constant 0 : index
    %c0_22 = arith.constant 0 : index
    %33 = vector.load %arg9[%c0_21, %c0_22] : memref<256x256xbf16, #tpu.memory_space<vmem>>, vector<256x256xbf16>
    %cst_23 = arith.constant dense<0.000000e+00> : vector<2x256xf32>
    %34 = tpu.matmul %32, %33, %cst_23 {dimension_numbers = #tpu.dot_dimension_numbers<[1], [0], [0], [1], [0, 0, 1, 1], [], []>} : vector<2x256xbf16>, vector<256x256xbf16>, vector<2x256xf32> -> vector<2x256xf32>
    %c0_24 = arith.constant 0 : index
    %c0_25 = arith.constant 0 : index
    %35 = vector.load %arg10[%c0_24, %c0_25] : memref<1x256xf32, #tpu.memory_space<vmem>>, vector<1x256xf32>
    %36 = vector.broadcast %35 : vector<1x256xf32> to vector<2x256xf32>
    %37 = arith.addf %34, %36 : vector<2x256xf32>
    %38 = arith.truncf %37 : vector<2x256xf32> to vector<2x256xbf16>
    %cst_26 = arith.constant 0.000000e+00 : bf16
    %39 = vector.broadcast %cst_26 : bf16 to vector<2x256xbf16>
    %40 = arith.maximumf %38, %39 : vector<2x256xbf16>
    %c0_27 = arith.constant 0 : index
    %c0_28 = arith.constant 0 : index
    %41 = vector.load %arg11[%c0_27, %c0_28] : memref<256x256xbf16, #tpu.memory_space<vmem>>, vector<256x256xbf16>
    %cst_29 = arith.constant dense<0.000000e+00> : vector<2x256xf32>
    %42 = tpu.matmul %40, %41, %cst_29 {dimension_numbers = #tpu.dot_dimension_numbers<[1], [0], [0], [1], [0, 0, 1, 1], [], []>} : vector<2x256xbf16>, vector<256x256xbf16>, vector<2x256xf32> -> vector<2x256xf32>
    %c0_30 = arith.constant 0 : index
    %c0_31 = arith.constant 0 : index
    %43 = vector.load %arg12[%c0_30, %c0_31] : memref<1x256xf32, #tpu.memory_space<vmem>>, vector<1x256xf32>
    %44 = vector.broadcast %43 : vector<1x256xf32> to vector<2x256xf32>
    %45 = arith.addf %42, %44 : vector<2x256xf32>
    %46 = arith.truncf %45 : vector<2x256xf32> to vector<2x256xbf16>
    %cst_32 = arith.constant 0.000000e+00 : bf16
    %47 = vector.broadcast %cst_32 : bf16 to vector<2x256xbf16>
    %48 = arith.maximumf %46, %47 : vector<2x256xbf16>
    %c0_33 = arith.constant 0 : index
    %c0_34 = arith.constant 0 : index
    %49 = vector.load %arg13[%c0_33, %c0_34] : memref<256x128xbf16, #tpu.memory_space<vmem>>, vector<256x128xbf16>
    %cst_35 = arith.constant dense<0.000000e+00> : vector<2x128xf32>
    %50 = tpu.matmul %48, %49, %cst_35 {dimension_numbers = #tpu.dot_dimension_numbers<[1], [0], [0], [1], [0, 0, 1, 1], [], []>} : vector<2x256xbf16>, vector<256x128xbf16>, vector<2x128xf32> -> vector<2x128xf32>
    %c0_36 = arith.constant 0 : index
    %c0_37 = arith.constant 0 : index
    %51 = vector.load %arg14[%c0_36, %c0_37] : memref<1x128xf32, #tpu.memory_space<vmem>>, vector<1x128xf32>
    %52 = vector.broadcast %51 : vector<1x128xf32> to vector<2x128xf32>
    %53 = arith.addf %50, %52 : vector<2x128xf32>
    %cst_38 = arith.constant 0.000000e+00 : f32
    %54 = vector.broadcast %cst_38 : f32 to vector<2x1xf32>
    %55 = arith.cmpf ogt, %23, %54 : vector<2x1xf32>
    %cst_39 = arith.constant 0.000000e+00 : f32
    %56 = vector.shape_cast %55 : vector<2x1xi1> to vector<2x1xi1>
    %57 = vector.broadcast %56 : vector<2x1xi1> to vector<2x128xi1>
    %58 = vector.broadcast %cst_39 : f32 to vector<2x128xf32>
    %59 = arith.select %57, %53, %58 : vector<2x128xi1>, vector<2x128xf32>
    %c0_40 = arith.constant 0 : index
    %c0_41 = arith.constant 0 : index
    %60 = vector.load %arg15[%c0_40, %c0_41] : memref<2x128xf32, #tpu.memory_space<vmem>>, vector<2x128xf32>
    tpu.vector_store %arg15[%c0_40, %c0_41], %59 {strides = array<i32>} : memref<2x128xf32, #tpu.memory_space<vmem>>, vector<2x128xf32>,
    return
  }
  func.func @transform_0(%arg0: i32) -> (i32, i32) {
    %c0_i32 = arith.constant 0 : i32
    %c0_i32_0 = arith.constant 0 : i32
    return %arg0, %c0_i32 : i32, i32
  }
  func.func @transform_1(%arg0: i32) -> (i32, i32) {
    %c0_i32 = arith.constant 0 : i32
    %c0_i32_0 = arith.constant 0 : i32
    return %arg0, %c0_i32 : i32, i32
  }
  func.func @transform_2(%arg0: i32) -> (i32, i32) {
    %c0_i32 = arith.constant 0 : i32
    %c0_i32_0 = arith.constant 0 : i32
    %c0_i32_1 = arith.constant 0 : i32
    return %c0_i32, %c0_i32_0 : i32, i32
  }
  func.func @transform_3(%arg0: i32) -> (i32, i32) {
    %c0_i32 = arith.constant 0 : i32
    %c0_i32_0 = arith.constant 0 : i32
    %c0_i32_1 = arith.constant 0 : i32
    return %c0_i32, %c0_i32_0 : i32, i32
  }
  func.func @transform_4(%arg0: i32) -> (i32, i32) {
    %c0_i32 = arith.constant 0 : i32
    %c0_i32_0 = arith.constant 0 : i32
    %c0_i32_1 = arith.constant 0 : i32
    return %c0_i32, %c0_i32_0 : i32, i32
  }
  func.func @transform_5(%arg0: i32) -> (i32, i32) {
    %c0_i32 = arith.constant 0 : i32
    %c0_i32_0 = arith.constant 0 : i32
    %c0_i32_1 = arith.constant 0 : i32
    return %c0_i32, %c0_i32_0 : i32, i32
  }
  func.func @transform_6(%arg0: i32) -> (i32, i32) {
    %c0_i32 = arith.constant 0 : i32
    %c0_i32_0 = arith.constant 0 : i32
    %c0_i32_1 = arith.constant 0 : i32
    return %c0_i32, %c0_i32_0 : i32, i32
  }
  func.func @transform_7(%arg0: i32) -> (i32, i32) {
    %c0_i32 = arith.constant 0 : i32
    %c0_i32_0 = arith.constant 0 : i32
    %c0_i32_1 = arith.constant 0 : i32
    return %c0_i32, %c0_i32_0 : i32, i32
  }
  func.func @transform_8(%arg0: i32) -> (i32, i32) {
    %c0_i32 = arith.constant 0 : i32
    %c0_i32_0 = arith.constant 0 : i32
    %c0_i32_1 = arith.constant 0 : i32
    return %c0_i32, %c0_i32_0 : i32, i32
  }
  func.func @transform_9(%arg0: i32) -> (i32, i32) {
    %c0_i32 = arith.constant 0 : i32
    %c0_i32_0 = arith.constant 0 : i32
    %c0_i32_1 = arith.constant 0 : i32
    return %c0_i32, %c0_i32_0 : i32, i32
  }
  func.func @transform_10(%arg0: i32) -> (i32, i32) {
    %c0_i32 = arith.constant 0 : i32
    %c0_i32_0 = arith.constant 0 : i32
    %c0_i32_1 = arith.constant 0 : i32
    return %c0_i32, %c0_i32_0 : i32, i32
  }
  func.func @transform_11(%arg0: i32) -> (i32, i32) {
    %c0_i32 = arith.constant 0 : i32
    %c0_i32_0 = arith.constant 0 : i32
    %c0_i32_1 = arith.constant 0 : i32
    return %c0_i32, %c0_i32_0 : i32, i32
  }
  func.func @transform_12(%arg0: i32) -> (i32, i32) {
    %c0_i32 = arith.constant 0 : i32
    %c0_i32_0 = arith.constant 0 : i32
    %c0_i32_1 = arith.constant 0 : i32
    return %c0_i32, %c0_i32_0 : i32, i32
  }
  func.func @transform_13(%arg0: i32) -> (i32, i32) {
    %c0_i32 = arith.constant 0 : i32
    %c0_i32_0 = arith.constant 0 : i32
    %c0_i32_1 = arith.constant 0 : i32
    return %c0_i32, %c0_i32_0 : i32, i32
  }
  func.func @transform_14(%arg0: i32) -> (i32, i32) {
    %c0_i32 = arith.constant 0 : i32
    %c0_i32_0 = arith.constant 0 : i32
    return %arg0, %c0_i32 : i32, i32
  }
}

</mosaic_0001>

<bundles_post_ra>
// kernel: tpu_custom_call.1
= control target key start
LH: loop header
LB: loop body
LE: loop exit
PB: predicated region body
PF: predicated region fallthrough
CT: control target
= control target key end

     0   :  { %19 = vsyncpa [#allocation3], 0  ;;  %s2239_s0 = inlined_call_operand.vmem [shape: bf16[16,8], index: 0, kind: input, shape index: {}]   ;;  %s2240_s1 = inlined_call_operand.vmem [shape: f32[2,8], index: 1, kind: input, shape index: {}]   ;;  %s2241_s2 = inlined_call_operand.vmem [shape: bf16[8,256], index: 2, kind: input, shape index: {}]   ;;  %s2242_s3 = inlined_call_operand.vmem [shape: f32[1,256], index: 3, kind: input, shape index: {}]   ;;  %s2243_s4 = inlined_call_operand.hbm [shape: bf16[256,256], index: 4, kind: input, shape index: {}]   ;;  %s2244_s5 = inlined_call_operand.vmem [shape: f32[1,256], index: 5, kind: input, shape index: {}]   ;;  %s2245_s6 = inlined_call_operand.hbm [shape: bf16[256,256], index: 6, kind: input, shape index: {}]   ;;  %s2246_s7 = inlined_call_operand.vmem [shape: f32[1,256], index: 7, kind: input, shape index: {}]   ;;  %s2247_s8 = inlined_call_operand.hbm [shape: bf16[256,256], index: 8, kind: input, shape index: {}]   ;;  %s2248_s9 = inlined_call_operand.vmem [shape: f32[1,256], index: 9, kind: input, shape index: {}]   ;;  %s2249_s10 = inlined_call_operand.hbm [shape: bf16[256,256], index: 10, kind: input, shape index: {}]   ;;  %s2250_s11 = inlined_call_operand.vmem [shape: f32[1,256], index: 11, kind: input, shape index: {}]   ;;  %s2251_s12 = inlined_call_operand.hbm [shape: bf16[256,128], index: 12, kind: input, shape index: {}]   ;;  %s2252_s13 = inlined_call_operand.vmem [shape: f32[1,128], index: 13, kind: input, shape index: {}]   ;;  %s2253_s14 = inlined_call_operand.hbm [shape: f32[2,128], index: 14, kind: output, shape index: {}]  }
   0x1   :  { %20 = vsyncpa [#allocation6], 0 }
   0x2   :  { %21 = vsyncpa [#allocation9], 0 }
   0x3   :  { %22 = vsyncpa [#allocation4], 0  ;;  %s1995_s29 = smov [#allocation5]   ;;  %s1996_s15 = smov [#allocation8]  }
   0x4   :  { %s50_s30 = sshll.u32 %s1995_s29, 4  ;;  %s78_s16 = sshll.u32 %s1996_s15, 4  ;;  %s51_s30 = int_to_ptr.vmem [resolvable:$true] %s50_s30  ;;  %s2081_s16 = int_to_ptr.vmem [resolvable:$true] %s78_s16 }
   0x5   :  { %s1855_s19 = scalar_lea.hbm %s2245_s6, 4096 }
   0x6   :  { %p1856_p0 = scmp.ne.s32.totalorder %s2245_s6, %s1855_s19  ;;  %p1859_p1 = scmp.lt.u32.totalorder %s1855_s19, %s2245_s6 }
   0x8   :  { %p1861_p2 = pnand %p1859_p1, %p1856_p0 }
   0xa   :  { %1864 = shalt.err (!%p1861_p2)
}
   0xb   :  { %s1865_s24 = scalar_lea.vmem %s51_s30, 4096  ;;  %p1870_p4 = scmp.lt.s32.totalorder %s51_s30, %s51_s30 }
   0xc   :  { %p1866_p3 = scmp.ne.s32.totalorder %s51_s30, %s1865_s24  ;;  %p1871_p5 = scmp.lt.s32.totalorder %s1865_s24, %s1865_s24 }
   0xe   :  { %p1872_p6 = por %p1871_p5, %p1870_p4 }
  0x10   :  { %p1873_p7 = pnand %p1872_p6, %p1866_p3 }
  0x12   :  { %1876 = shalt.err (!%p1873_p7)
}
  0x13   :  { %s1997_s25 = smov 128   ;;  %s1998_s26 = smov 8  }
  0x14   :  { %56 = dma.hbm_to_vmem [thread:$0]  %s2245_s6, 4096, %s51_s30, [#allocation6], %s1997_s25, %s1997_s25, %s1998_s26  }
  0x15   :  { %s1877_s17 = scalar_lea.hbm %s2249_s10, 4096 }
  0x16   :  { %p1878_p8 = scmp.ne.s32.totalorder %s2249_s10, %s1877_s17  ;;  %p1881_p9 = scmp.lt.u32.totalorder %s1877_s17, %s2249_s10 }
  0x18   :  { %p1883_p10 = pnand %p1881_p9, %p1878_p8 }
  0x1a   :  { %1886 = shalt.err (!%p1883_p10)
}
  0x1b   :  { %s1887_s22 = scalar_lea.vmem %s2081_s16, 4096  ;;  %p1892_p12 = scmp.lt.s32.totalorder %s2081_s16, %s2081_s16 }
  0x1c   :  { %p1888_p11 = scmp.ne.s32.totalorder %s2081_s16, %s1887_s22  ;;  %p1893_p13 = scmp.lt.s32.totalorder %s1887_s22, %s1887_s22 }
  0x1e   :  { %p1894_p0 = por %p1893_p13, %p1892_p12 }
  0x20   :  { %p1895_p1 = pnand %p1894_p0, %p1888_p11 }
  0x22   :  { %1898 = shalt.err (!%p1895_p1)
}
  0x23   :  { %84 = dma.hbm_to_vmem [thread:$0]  %s2249_s10, 4096, %s2081_s16, [#allocation9], %s1997_s25, %s1997_s25, %s1998_s26  }
  0x24   :  { %s1999_s23 = smov [#allocation2]   ;;  %s2000_s27 = smov [#allocation7]  }
  0x25   :  { %s36_s24 = sshll.u32 %s1999_s23, 4  ;;  %s64_s28 = sshll.u32 %s2000_s27, 4  ;;  %s37_s24 = int_to_ptr.vmem [resolvable:$true] %s36_s24  ;;  %s2118_s28 = int_to_ptr.vmem [resolvable:$true] %s64_s28 }
  0x26   :  { %s1899_s17 = scalar_lea.hbm %s2243_s4, 4096 }
  0x27   :  { %p1900_p2 = scmp.ne.s32.totalorder %s2243_s4, %s1899_s17  ;;  %p1903_p3 = scmp.lt.u32.totalorder %s1899_s17, %s2243_s4 }
  0x29   :  { %p1905_p4 = pnand %p1903_p3, %p1900_p2 }
  0x2b   :  { %1908 = shalt.err (!%p1905_p4)
}
  0x2c   :  { %s1909_s10 = scalar_lea.vmem %s37_s24, 4096  ;;  %p1914_p6 = scmp.lt.s32.totalorder %s37_s24, %s37_s24 }
  0x2d   :  { %p1910_p5 = scmp.ne.s32.totalorder %s37_s24, %s1909_s10  ;;  %p1915_p7 = scmp.lt.s32.totalorder %s1909_s10, %s1909_s10 }
  0x2f   :  { %p1916_p8 = por %p1915_p7, %p1914_p6 }
  0x31   :  { %p1917_p9 = pnand %p1916_p8, %p1910_p5 }
  0x33   :  { %1920 = shalt.err (!%p1917_p9)
}
  0x34   :  { %42 = dma.hbm_to_vmem [thread:$0]  %s2243_s4, 4096, %s37_s24, [#allocation3], %s1997_s25, %s1997_s25, %s1998_s26  }
  0x35   :  { %s1921_s23 = scalar_lea.hbm %s2247_s8, 4096 }
  0x36   :  { %p1922_p10 = scmp.ne.s32.totalorder %s2247_s8, %s1921_s23  ;;  %p1925_p11 = scmp.lt.u32.totalorder %s1921_s23, %s2247_s8 }
  0x38   :  { %p1927_p12 = pnand %p1925_p11, %p1922_p10 }
  0x3a   :  { %1930 = shalt.err (!%p1927_p12)
}
  0x3b   :  { %s1931_s18 = scalar_lea.vmem %s2118_s28, 4096  ;;  %p1936_p0 = scmp.lt.s32.totalorder %s2118_s28, %s2118_s28 }
  0x3c   :  { %p1932_p13 = scmp.ne.s32.totalorder %s2118_s28, %s1931_s18  ;;  %p1937_p1 = scmp.lt.s32.totalorder %s1931_s18, %s1931_s18 }
  0x3e   :  { %p1938_p2 = por %p1937_p1, %p1936_p0 }
  0x40   :  { %p1939_p3 = pnand %p1938_p2, %p1932_p13 }
  0x42   :  { %1942 = shalt.err (!%p1939_p3)
}
  0x43   :  { %70 = dma.hbm_to_vmem [thread:$0]  %s2247_s8, 4096, %s2118_s28, [#allocation6], %s1997_s25, %s1997_s25, %s1998_s26  }
  0x44   :  { %s2001_s19 = smov [#allocation10]   ;;  %s1943_s16 = scalar_lea.hbm %s2251_s12, 2048 }
  0x45   :  { %s92_s20 = sshll.u32 %s2001_s19, 4  ;;  %p1944_p4 = scmp.ne.s32.totalorder %s2251_s12, %s1943_s16  ;;  %s93_s20 = int_to_ptr.vmem [resolvable:$true] %s92_s20 }
  0x46   :  { %p1947_p5 = scmp.lt.u32.totalorder %s1943_s16, %s2251_s12 }
  0x48   :  { %p1949_p6 = pnand %p1947_p5, %p1944_p4 }
  0x4a   :  { %1952 = shalt.err (!%p1949_p6)
}
  0x4b   :  { %s1953_s27 = scalar_lea.vmem %s93_s20, 2048  ;;  %p1958_p8 = scmp.lt.s32.totalorder %s93_s20, %s93_s20 }
  0x4c   :  { %p1954_p7 = scmp.ne.s32.totalorder %s93_s20, %s1953_s27  ;;  %p1959_p9 = scmp.lt.s32.totalorder %s1953_s27, %s1953_s27 }
  0x4e   :  { %p1960_p10 = por %p1959_p9, %p1958_p8 }
  0x50   :  { %p1961_p11 = pnand %p1960_p10, %p1954_p7 }
  0x52   :  { %1964 = shalt.err (!%p1961_p11)
}
  0x53   :  { %s2002_s8 = smov 64   ;;  %s2003_s25 = smov 4  }
  0x54   :  { %98 = dma.hbm_to_vmem [thread:$0]  %s2251_s12, 2048, %s93_s20, [#allocation9], %s2002_s8, %s2002_s8, %s2003_s25  }
  0x55   :  { %1987 = dma.done.wait [#allocation3], 4096  }
  0x56   :  { %1988 = vsyncadd [#allocation3], 4294963200 }
  0x57   :  { %1989 = dma.done.wait [#allocation6], 8192  }
  0x58   :  { %1990 = vsyncadd [#allocation6], 4294959104 }
  0x59   :  { %1991 = dma.done.wait [#allocation9], 6144  }
  0x5a   :  { %1992 = vsyncadd [#allocation9], 4294961152  ;;  %v2004_v0 = vmov 0   ;;  %v120_v1 = vld [vmem:[%s2241_s2] sm:$0xff]  ;;  %vm147_vm0 = vcmask 1043456   ;;  %vm143_vm1 = vcmask 64512   ;;  %v123_v35 = vlaneseq }
  0x5b   :  { %186 = vmatprep.mubr.bf16.mxu0 %v2004_v0  ;;  %v1463_v2 = vcombine.high %v120_v1, %v120_v1  ;;  %v1462_v3 = vcombine.low %v120_v1, %v120_v1  ;;  %v1647_v4 = vld [vmem:[#allocation2 + $0x4] ss:$8 sps:$4 sm:$0xff]   ;;  %v1649_v5 = vld [vmem:[#allocation2] ss:$8 sps:$4 sm:$0xff]   ;;  %v1646_v7 = vld [vmem:[%s2239_s0] sm:$0xff]   ;;  %vm494_vm2 = vcmask 58368  }
  0x5c   :  { %v1650_v8 = vld [vmem:[#allocation2 + $0x14] ss:$8 sps:$4 sm:$0xff]   ;;  %405 = vmatprep.subr.bf16.mxu1 %v1647_v4  ;;  %v1652_v9 = vld [vmem:[#allocation2 + $0x10] ss:$8 sps:$4 sm:$0xff]   ;;  %v1653_v10 = vld [vmem:[#allocation2 + $0x24] ss:$8 sps:$4 sm:$0xff]  }
  0x5d   :  { %1464 = vmatprep.subr.msk.bf16.mxu0 %vm147_vm0, %v1463_v2  ;;  %v149_v6 = vsel %vm147_vm0, %v1462_v3, 0  ;;  %406 = vmatpush1.bf16.msra.mxu1 %v1649_v5  ;;  %v1655_v11 = vld [vmem:[#allocation2 + $0x20] ss:$8 sps:$4 sm:$0xff]   ;;  %v1656_v12 = vld [vmem:[#allocation2 + $0x34] ss:$8 sps:$4 sm:$0xff]   ;;  %v124_v39 = vshrl.u32 %v123_v35, 7 }
  0x5e   :  { %155 = vmatpush1.bf16.msra.mxu0 %v149_v6  ;;  %407 = vmatprep.subr.bf16.mxu1 %v1650_v8  ;;  %v1658_v13 = vld [vmem:[#allocation2 + $0x30] ss:$8 sps:$4 sm:$0xff]   ;;  %v1659_v14 = vld [vmem:[#allocation2 + $0x44] ss:$8 sps:$4 sm:$0xff]   ;;  %v1661_v15 = vld [vmem:[#allocation2 + $0x40] ss:$8 sps:$4 sm:$0xff]  }
  0x5f   :  { %v1662_v16 = vld [vmem:[#allocation2 + $0x54] ss:$8 sps:$4 sm:$0xff]   ;;  %v1664_v17 = vld [vmem:[#allocation2 + $0x50] ss:$8 sps:$4 sm:$0xff]   ;;  %v1665_v18 = vld [vmem:[#allocation2 + $0x64] ss:$8 sps:$4 sm:$0xff]  }
  0x60   :  { %v1667_v19 = vld [vmem:[#allocation2 + $0x60] ss:$8 sps:$4 sm:$0xff]   ;;  %v1668_v20 = vld [vmem:[#allocation2 + $0x74] ss:$8 sps:$4 sm:$0xff]   ;;  %v1670_v21 = vld [vmem:[#allocation2 + $0x70] ss:$8 sps:$4 sm:$0xff]  }
  0x61   :  { %1465 = vmatmul.mubr.msk.bf16.vlgmr.msra.gmra.mrb[0].mxu0 %vm143_vm1, %v1646_v7  ;;  %408 = vmatpush1.bf16.msra.mxu1 %v1652_v9  ;;  %v1671_v22 = vld [vmem:[#allocation2 + $0x84] ss:$8 sps:$4 sm:$0xff]   ;;  %v1673_v23 = vld [vmem:[#allocation2 + $0x80] ss:$8 sps:$4 sm:$0xff]   ;;  %v1674_v24 = vld [vmem:[#allocation2 + $0x94] ss:$8 sps:$4 sm:$0xff]  }
  0x62   :  { %409 = vmatprep.subr.bf16.mxu1 %v1653_v10  ;;  %v1676_v25 = vld [vmem:[#allocation2 + $0x90] ss:$8 sps:$4 sm:$0xff]   ;;  %v1677_v26 = vld [vmem:[#allocation2 + $0xa4] ss:$8 sps:$4 sm:$0xff]   ;;  %v1679_v27 = vld [vmem:[#allocation2 + $0xa0] ss:$8 sps:$4 sm:$0xff]  }
  0x63   :  { %v1680_v28 = vld [vmem:[#allocation2 + $0xb4] ss:$8 sps:$4 sm:$0xff]   ;;  %v1682_v29 = vld [vmem:[#allocation2 + $0xb0] ss:$8 sps:$4 sm:$0xff]   ;;  %v1683_v30 = vld [vmem:[#allocation2 + $0xc4] ss:$8 sps:$4 sm:$0xff]  }
  0x64   :  { %v1685_v31 = vld [vmem:[#allocation2 + $0xc0] ss:$8 sps:$4 sm:$0xff]   ;;  %v1686_v32 = vld [vmem:[#allocation2 + $0xd4] ss:$8 sps:$4 sm:$0xff]   ;;  %v1688_v33 = vld [vmem:[#allocation2 + $0xd0] ss:$8 sps:$4 sm:$0xff]  }
  0x65   :  { %410 = vmatpush1.bf16.msra.mxu1 %v1655_v11  ;;  %v1689_v34 = vld [vmem:[#allocation2 + $0xe4] ss:$8 sps:$4 sm:$0xff]   ;;  %v1691_v36 = vld [vmem:[#allocation2 + $0xe0] ss:$8 sps:$4 sm:$0xff]   ;;  %v1692_v37 = vld [vmem:[#allocation2 + $0xf4] ss:$8 sps:$4 sm:$0xff]  }
  0x66   :  { %411 = vmatprep.subr.bf16.mxu1 %v1656_v12  ;;  %v1694_v38 = vld [vmem:[#allocation2 + $0xf0] ss:$8 sps:$4 sm:$0xff]   ;;  %v2174_v40 = vsub.s32 0, %v124_v39  ;;  %v1695_v42 = vld [vmem:[#allocation5] ss:$8 sps:$4 sm:$0xff]   ;;  %v2181_v44 = vsub.s32 1, %v124_v39 }
  0x67   :  { %v2179_v41 = vld [vmem:[%s2240_s1] sm:$0x3]  ;;  %v1697_v43 = vld [vmem:[#allocation5 + $0x4] ss:$8 sps:$4 sm:$0xff]   ;;  %v1700_v46 = vld [vmem:[#allocation5 + $0x14] ss:$8 sps:$4 sm:$0xff]  }
  0x68   :  { %v455_v45 = vrot.slane %v2179_v41, %v2174_v40  ;;  %723 = vmatprep.subr.bf16.mxu0 %v1697_v43  ;;  %v462_v47 = vrot.slane %v2179_v41, %v2181_v44  ;;  %v1698_v48 = vld [vmem:[#allocation5 + $0x10] ss:$8 sps:$4 sm:$0xff]   ;;  %v1703_v49 = vld [vmem:[#allocation5 + $0x24] ss:$8 sps:$4 sm:$0xff]   ;;  %v1701_v50 = vld [vmem:[#allocation5 + $0x20] ss:$8 sps:$4 sm:$0xff]  }
  0x69   :  { %412 = vmatpush1.bf16.msra.mxu1 %v1658_v13  ;;  %724 = vmatpush1.bf16.msra.mxu0 %v1695_v42  ;;  %v1706_v51 = vld [vmem:[#allocation5 + $0x34] ss:$8 sps:$4 sm:$0xff]   ;;  %v1704_v52 = vld [vmem:[#allocation5 + $0x30] ss:$8 sps:$4 sm:$0xff]   ;;  %v1709_v53 = vld [vmem:[#allocation5 + $0x44] ss:$8 sps:$4 sm:$0xff]  }
  0x6a   :  { %413 = vmatprep.subr.bf16.mxu1 %v1659_v14  ;;  %457 = vbcast.lane.b32.xlu0 %v455_v45, 256  ;;  %v1707_v54 = vld [vmem:[#allocation5 + $0x40] ss:$8 sps:$4 sm:$0xff]   ;;  %v1712_v55 = vld [vmem:[#allocation5 + $0x54] ss:$8 sps:$4 sm:$0xff]   ;;  %vm556_vm3 = vcmask 1041409  }
  0x6b   :  { %725 = vmatprep.subr.bf16.mxu0 %v1700_v46  ;;  %v1710_v56 = vld [vmem:[#allocation5 + $0x50] ss:$8 sps:$4 sm:$0xff]   ;;  %v1715_v57 = vld [vmem:[#allocation5 + $0x64] ss:$8 sps:$4 sm:$0xff]   ;;  %v1713_v58 = vld [vmem:[#allocation5 + $0x60] ss:$8 sps:$4 sm:$0xff]  }
  0x6c   :  { %v1718_v59 = vld [vmem:[#allocation5 + $0x74] ss:$8 sps:$4 sm:$0xff]   ;;  %v1716_v60 = vld [vmem:[#allocation5 + $0x70] ss:$8 sps:$4 sm:$0xff]   ;;  %v1721_v61 = vld [vmem:[#allocation5 + $0x84] ss:$8 sps:$4 sm:$0xff]  }
  0x6d   :  { %414 = vmatpush1.bf16.msra.mxu1 %v1661_v15  ;;  %726 = vmatpush1.bf16.msra.mxu0 %v1698_v48  ;;  %v1719_v62 = vld [vmem:[#allocation5 + $0x80] ss:$8 sps:$4 sm:$0xff]   ;;  %v121_v63 = vld [vmem:[%s2242_s3] sm:$0x3]  ;;  %v1724_v15 = vld [vmem:[#allocation5 + $0x94] ss:$8 sps:$4 sm:$0xff]  }
  0x6e   :  { %415 = vmatprep.subr.bf16.mxu1 %v1662_v16  ;;  %464 = vbcast.lane.b32.xlu0 %v462_v47, 256  ;;  %v126_v1 = vrot.slane %v121_v63, %v2174_v40  ;;  %v130_v3 = vrot.slane %v121_v63, %v2181_v44  ;;  %v1722_v16 = vld [vmem:[#allocation5 + $0x90] ss:$8 sps:$4 sm:$0xff]   ;;  %v1749_v35 = vld [vmem:[#allocation7 + $0x20] ss:$8 sps:$4 sm:$0xff]   ;;  %s2005_s10 = smov [#allocation11]  }
  0x6f   :  { %727 = vmatprep.subr.bf16.mxu0 %v1703_v49  ;;  %v1755_v39 = vld [vmem:[#allocation7 + $0x40] ss:$8 sps:$4 sm:$0xff]   ;;  %v1760_v42 = vld [vmem:[#allocation7 + $0x54] ss:$8 sps:$4 sm:$0xff]   ;;  %v1763_v43 = vld [vmem:[#allocation7 + $0x64] ss:$8 sps:$4 sm:$0xff]  }
  0x70   :  { %v1761_v45 = vld [vmem:[#allocation7 + $0x60] ss:$8 sps:$4 sm:$0xff]   ;;  %v1766_v46 = vld [vmem:[#allocation7 + $0x74] ss:$8 sps:$4 sm:$0xff]   ;;  %v1764_v47 = vld [vmem:[#allocation7 + $0x70] ss:$8 sps:$4 sm:$0xff]  }
  0x71   :  { %416 = vmatpush1.bf16.msra.mxu1 %v1664_v17  ;;  %728 = vmatpush1.bf16.msra.mxu0 %v1701_v50  ;;  %v1727_v17 = vld [vmem:[#allocation5 + $0xa4] ss:$8 sps:$4 sm:$0xff]   ;;  %v1767_v49 = vld [vmem:[#allocation7 + $0x80] ss:$8 sps:$4 sm:$0xff]   ;;  %v1772_v50 = vld [vmem:[#allocation7 + $0x94] ss:$8 sps:$4 sm:$0xff]  }
  0x72   :  { %417 = vmatprep.subr.bf16.mxu1 %v1665_v18  ;;  %729 = vmatprep.subr.bf16.mxu0 %v1706_v51  ;;  %v1725_v18 = vld [vmem:[#allocation5 + $0xa0] ss:$8 sps:$4 sm:$0xff]   ;;  %v1769_v48 = vld [vmem:[#allocation7 + $0x84] ss:$8 sps:$4 sm:$0xff]   ;;  %v1770_v51 = vld [vmem:[#allocation7 + $0x90] ss:$8 sps:$4 sm:$0xff]  }
  0x73   :  { %s1450_s16 = sshll.u32 %s2005_s10, 4  ;;  %s1451_s16 = int_to_ptr.vmem [resolvable:$true] %s1450_s16 }
  0x74   :  { %s1965_s22 = scalar_lea.vmem %s1451_s16, 32  ;;  %p1970_p13 = scmp.lt.s32.totalorder %s1451_s16, %s1451_s16 }
  0x75   :  { %418 = vmatpush1.bf16.msra.mxu1 %v1667_v19  ;;  %730 = vmatpush1.bf16.msra.mxu0 %v1704_v52  ;;  %v1730_v19 = vld [vmem:[#allocation5 + $0xb4] ss:$8 sps:$4 sm:$0xff]   ;;  %v1775_v52 = vld [vmem:[#allocation7 + $0xa4] ss:$8 sps:$4 sm:$0xff]   ;;  %p1966_p12 = scmp.ne.s32.totalorder %s1451_s16, %s1965_s22  ;;  %p1971_p0 = scmp.lt.s32.totalorder %s1965_s22, %s1965_s22 }
  0x76   :  { %419 = vmatprep.subr.bf16.mxu1 %v1668_v20  ;;  %731 = vmatprep.subr.bf16.mxu0 %v1709_v53  ;;  %v1728_v20 = vld [vmem:[#allocation5 + $0xb0] ss:$8 sps:$4 sm:$0xff]   ;;  %v1773_v53 = vld [vmem:[#allocation7 + $0xa0] ss:$8 sps:$4 sm:$0xff]  }
  0x77   :  { %p1972_p1 = por %p1971_p0, %p1970_p13 }
  0x79   :  { %420 = vmatpush1.bf16.msra.mxu1 %v1670_v21  ;;  %732 = vmatpush1.bf16.msra.mxu0 %v1707_v54  ;;  %v1733_v21 = vld [vmem:[#allocation5 + $0xc4] ss:$8 sps:$4 sm:$0xff]   ;;  %v1778_v54 = vld [vmem:[#allocation7 + $0xb4] ss:$8 sps:$4 sm:$0xff]   ;;  %p1973_p2 = pnand %p1972_p1, %p1966_p12 }
  0x7a   :  { %421 = vmatprep.subr.bf16.mxu1 %v1671_v22  ;;  %733 = vmatprep.subr.bf16.mxu0 %v1712_v55  ;;  %v1731_v22 = vld [vmem:[#allocation5 + $0xc0] ss:$8 sps:$4 sm:$0xff]   ;;  %v1776_v55 = vld [vmem:[#allocation7 + $0xb0] ss:$8 sps:$4 sm:$0xff]  }
  0x7d   :  { %422 = vmatpush1.bf16.msra.mxu1 %v1673_v23  ;;  %734 = vmatpush1.bf16.msra.mxu0 %v1710_v56  ;;  %v1736_v23 = vld [vmem:[#allocation5 + $0xd4] ss:$8 sps:$4 sm:$0xff]   ;;  %v1781_v56 = vld [vmem:[#allocation7 + $0xc4] ss:$8 sps:$4 sm:$0xff]  }
  0x7e   :  { %423 = vmatprep.subr.bf16.mxu1 %v1674_v24  ;;  %735 = vmatprep.subr.bf16.mxu0 %v1715_v57  ;;  %v1734_v24 = vld [vmem:[#allocation5 + $0xd0] ss:$8 sps:$4 sm:$0xff]   ;;  %v1779_v57 = vld [vmem:[#allocation7 + $0xc0] ss:$8 sps:$4 sm:$0xff]  }
  0x81   :  { %424 = vmatpush1.bf16.msra.mxu1 %v1676_v25  ;;  %736 = vmatpush1.bf16.msra.mxu0 %v1713_v58  ;;  %v1739_v25 = vld [vmem:[#allocation5 + $0xe4] ss:$8 sps:$4 sm:$0xff]   ;;  %v1784_v58 = vld [vmem:[#allocation7 + $0xd4] ss:$8 sps:$4 sm:$0xff]  }
  0x82   :  { %425 = vmatprep.subr.bf16.mxu1 %v1677_v26  ;;  %737 = vmatprep.subr.bf16.mxu0 %v1718_v59  ;;  %v1737_v26 = vld [vmem:[#allocation5 + $0xe0] ss:$8 sps:$4 sm:$0xff]   ;;  %v1782_v59 = vld [vmem:[#allocation7 + $0xd0] ss:$8 sps:$4 sm:$0xff]  }
  0x85   :  { %426 = vmatpush1.bf16.msra.mxu1 %v1679_v27  ;;  %738 = vmatpush1.bf16.msra.mxu0 %v1716_v60  ;;  %v1740_v27 = vld [vmem:[#allocation5 + $0xf0] ss:$8 sps:$4 sm:$0xff]   ;;  %v1787_v60 = vld [vmem:[#allocation7 + $0xe4] ss:$8 sps:$4 sm:$0xff]  }
  0x86   :  { %427 = vmatprep.subr.bf16.mxu1 %v1680_v28  ;;  %739 = vmatprep.subr.bf16.mxu0 %v1721_v61  ;;  %v1742_v28 = vld [vmem:[#allocation5 + $0xf4] ss:$8 sps:$4 sm:$0xff]   ;;  %v1785_v61 = vld [vmem:[#allocation7 + $0xe0] ss:$8 sps:$4 sm:$0xff]  }
  0x89   :  { %428 = vmatpush1.bf16.msra.mxu1 %v1682_v29  ;;  %740 = vmatpush1.bf16.msra.mxu0 %v1719_v62  ;;  %v1743_v29 = vld [vmem:[#allocation7] ss:$8 sps:$4 sm:$0xff]   ;;  %v233_v62 = vld [vmem:[%s2244_s5] sm:$0x3] }
  0x8a   :  { %429 = vmatprep.subr.bf16.mxu1 %v1683_v30  ;;  %741 = vmatprep.subr.bf16.mxu0 %v1724_v15  ;;  %v1745_v30 = vld [vmem:[#allocation7 + $0x4] ss:$8 sps:$4 sm:$0xff]   ;;  %v238_v63 = vrot.slane %v233_v62, %v2174_v40 }
  0x8d   :  { %430 = vmatpush1.bf16.msra.mxu1 %v1685_v31  ;;  %742 = vmatpush1.bf16.msra.mxu0 %v1722_v16  ;;  %v495_v31 = vsel %vm494_vm2, %v2179_v41, 0.0  ;;  %v1758_v41 = vld [vmem:[#allocation7 + $0x50] ss:$8 sps:$4 sm:$0xff]  }
  0x8e   :  { %431 = vmatprep.subr.bf16.mxu1 %v1686_v32  ;;  %743 = vmatprep.subr.bf16.mxu0 %v1727_v17  ;;  %v1748_v32 = vld [vmem:[#allocation7 + $0x14] ss:$8 sps:$4 sm:$0xff]  }
  0x8f   :  { %496 = vadd.xlane.f32.xlu1 %v495_v31 }
  0x91   :  { %432 = vmatpush1.bf16.msra.mxu1 %v1688_v33  ;;  %744 = vmatpush1.bf16.msra.mxu0 %v1725_v18  ;;  %v1746_v33 = vld [vmem:[#allocation7 + $0x10] ss:$8 sps:$4 sm:$0xff]  }
  0x92   :  { %433 = vmatprep.subr.bf16.mxu1 %v1689_v34  ;;  %745 = vmatprep.subr.bf16.mxu0 %v1730_v19  ;;  %v1751_v34 = vld [vmem:[#allocation7 + $0x24] ss:$8 sps:$4 sm:$0xff]  }
  0x95   :  { %434 = vmatpush1.bf16.msra.mxu1 %v1691_v36  ;;  %746 = vmatpush1.bf16.msra.mxu0 %v1728_v20  ;;  %v1754_v36 = vld [vmem:[#allocation7 + $0x34] ss:$8 sps:$4 sm:$0xff]  }
  0x96   :  { %435 = vmatprep.subr.bf16.mxu1 %v1692_v37  ;;  %747 = vmatprep.subr.bf16.mxu0 %v1733_v21  ;;  %v1752_v37 = vld [vmem:[#allocation7 + $0x30] ss:$8 sps:$4 sm:$0xff]  }
  0x99   :  { %436 = vmatpush1.bf16.msra.mxu1 %v1694_v38  ;;  %748 = vmatpush1.bf16.msra.mxu0 %v1731_v22  ;;  %v1757_v38 = vld [vmem:[#allocation7 + $0x44] ss:$8 sps:$4 sm:$0xff]  }
  0x9a   :  { %749 = vmatprep.subr.bf16.mxu0 %v1736_v23  ;;  %970 = vmatprep.subr.bf16.mxu1 %v1745_v30 }
  0x9d   :  { %750 = vmatpush1.bf16.msra.mxu0 %v1734_v24 }
  0x9e   :  { %751 = vmatprep.subr.bf16.mxu0 %v1739_v25 }
  0xa1   :  { %752 = vmatpush1.bf16.msra.mxu0 %v1737_v26 }
  0xa2   :  { %753 = vmatprep.subr.bf16.mxu0 %v1742_v28 }
  0xa5   :  { %754 = vmatpush1.bf16.msra.mxu0 %v1740_v27 }
 0x134   :  { %v188_v2 = vpop.f32.mrb[0].mxu0 }
 0x135   :  { %v190_v4 = vpop.f32.mrb[1].mxu0  ;;  %v189_v6 = vadd.f32 %v188_v2, %v126_v1  ;;  %v458_v2 = vpop.permute.xlu0 %457 }
 0x136   :  { %v192_v5 = vpop.f32.mrb[2].mxu0  ;;  %v191_v9 = vadd.f32 %v190_v4, %v130_v3 }
 0x137   :  { %v193_v7 = vadd.f32 %v192_v5, %v126_v1  ;;  %v194_v8 = vpop.f32.mrb[3].mxu0  ;;  %v242_v1 = vrot.slane %v233_v62, %v2181_v44  ;;  %v1796_v62 = vld [vmem:[#allocation8 + $0x14] ss:$8 sps:$4 sm:$0xff]  }
 0x138   :  { %v195_v10 = vadd.f32 %v194_v8, %v130_v3 }
 0x139   :  { %v197_v11 = vpack.c.bf16 %v193_v7, %v189_v6 }
 0x13a   :  { %v198_v12 = vpack.c.bf16 %v195_v10, %v191_v9 }
 0x13b   :  { %v199_v14 = vmax.bf16 %v2004_v0, %v197_v11 }
 0x13c   :  { %v200_v13 = vmax.bf16 %v2004_v0, %v198_v12 }
 0x13e   :  { %437 = vmatprep.mubr.bf16.mxu1 %v200_v13  ;;  %v465_v13 = vpop.permute.xlu0 %464 }
 0x13f   :  { %438 = vmatmul.mubr.bf16.vlgmr.msra.gmra.mrb[0].mxu1 %v199_v14 }
 0x140   :  { %971 = vmatpush1.bf16.msra.mxu1 %v1743_v29 }
 0x141   :  { %972 = vmatprep.subr.bf16.mxu1 %v1748_v32 }
 0x144   :  { %973 = vmatpush1.bf16.msra.mxu1 %v1746_v33 }
 0x145   :  { %974 = vmatprep.subr.bf16.mxu1 %v1751_v34 }
 0x148   :  { %975 = vmatpush1.bf16.msra.mxu1 %v1749_v35 }
 0x149   :  { %976 = vmatprep.subr.bf16.mxu1 %v1754_v36 }
 0x14c   :  { %977 = vmatpush1.bf16.msra.mxu1 %v1752_v37 }
 0x14d   :  { %978 = vmatprep.subr.bf16.mxu1 %v1757_v38 }
 0x150   :  { %979 = vmatpush1.bf16.msra.mxu1 %v1755_v39 }
 0x151   :  { %980 = vmatprep.subr.bf16.mxu1 %v1760_v42 }
 0x154   :  { %981 = vmatpush1.bf16.msra.mxu1 %v1758_v41 }
 0x155   :  { %982 = vmatprep.subr.bf16.mxu1 %v1763_v43 }
 0x158   :  { %983 = vmatpush1.bf16.msra.mxu1 %v1761_v45 }
 0x159   :  { %984 = vmatprep.subr.bf16.mxu1 %v1766_v46 }
 0x15c   :  { %985 = vmatpush1.bf16.msra.mxu1 %v1764_v47 }
 0x15d   :  { %986 = vmatprep.subr.bf16.mxu1 %v1769_v48 }
 0x160   :  { %987 = vmatpush1.bf16.msra.mxu1 %v1767_v49 }
 0x161   :  { %988 = vmatprep.subr.bf16.mxu1 %v1772_v50 }
 0x164   :  { %989 = vmatpush1.bf16.msra.mxu1 %v1770_v51 }
 0x165   :  { %990 = vmatprep.subr.bf16.mxu1 %v1775_v52 }
 0x168   :  { %991 = vmatpush1.bf16.msra.mxu1 %v1773_v53 }
 0x169   :  { %992 = vmatprep.subr.bf16.mxu1 %v1778_v54 }
 0x16c   :  { %993 = vmatpush1.bf16.msra.mxu1 %v1776_v55 }
 0x16d   :  { %994 = vmatprep.subr.bf16.mxu1 %v1781_v56 }
 0x170   :  { %995 = vmatpush1.bf16.msra.mxu1 %v1779_v57 }
 0x171   :  { %996 = vmatprep.subr.bf16.mxu1 %v1784_v58  ;;  %v1790_v58 = vld [vmem:[#allocation7 + $0xf4] ss:$8 sps:$4 sm:$0xff]  }
 0x174   :  { %997 = vmatpush1.bf16.msra.mxu1 %v1782_v59  ;;  %v1788_v59 = vld [vmem:[#allocation7 + $0xf0] ss:$8 sps:$4 sm:$0xff]  }
 0x175   :  { %998 = vmatprep.subr.bf16.mxu1 %v1787_v60  ;;  %v1791_v60 = vld [vmem:[#allocation8] ss:$8 sps:$4 sm:$0xff]  }
 0x178   :  { %999 = vmatpush1.bf16.msra.mxu1 %v1785_v61  ;;  %v1793_v61 = vld [vmem:[#allocation8 + $0x4] ss:$8 sps:$4 sm:$0xff]  }
 0x179   :  { %1000 = vmatprep.subr.bf16.mxu1 %v1790_v58  ;;  %1219 = vmatprep.subr.bf16.mxu0 %v1793_v61 }
 0x17c   :  { %1001 = vmatpush1.bf16.msra.mxu1 %v1788_v59 }
 0x212   :  { %v439_v3 = vpop.f32.mrb[0].mxu1 }
 0x213   :  { %v440_v4 = vadd.f32 %v439_v3, %v238_v63  ;;  %v441_v5 = vpop.f32.mrb[1].mxu1  ;;  %v1802_v3 = vld [vmem:[#allocation8 + $0x34] ss:$8 sps:$4 sm:$0xff]  }
 0x214   :  { %v442_v6 = vadd.f32 %v441_v5, %v242_v1  ;;  %v443_v7 = vpop.f32.mrb[2].mxu1  ;;  %v1805_v5 = vld [vmem:[#allocation8 + $0x44] ss:$8 sps:$4 sm:$0xff]  }
 0x215   :  { %v448_v8 = vmax.f32 %v440_v4, 0.0  ;;  %v444_v9 = vadd.f32 %v443_v7, %v238_v63  ;;  %v445_v10 = vpop.f32.mrb[3].mxu1  ;;  %v1794_v63 = vld [vmem:[#allocation8 + $0x10] ss:$8 sps:$4 sm:$0xff]   ;;  %v1808_v7 = vld [vmem:[#allocation8 + $0x54] ss:$8 sps:$4 sm:$0xff]  }
 0x216   :  { %v449_v11 = vmax.f32 %v442_v6, 0.0  ;;  %v446_v12 = vadd.f32 %v445_v10, %v242_v1  ;;  %v1799_v1 = vld [vmem:[#allocation8 + $0x24] ss:$8 sps:$4 sm:$0xff]   ;;  %v1800_v4 = vld [vmem:[#allocation8 + $0x30] ss:$8 sps:$4 sm:$0xff]  }
 0x217   :  { %v466_v14 = vmul.f32 %v458_v2, %v448_v8  ;;  %v450_v15 = vmax.f32 %v444_v9, 0.0  ;;  %v1803_v6 = vld [vmem:[#allocation8 + $0x40] ss:$8 sps:$4 sm:$0xff]   ;;  %v1806_v8 = vld [vmem:[#allocation8 + $0x50] ss:$8 sps:$4 sm:$0xff]  }
 0x218   :  { %v467_v16 = vmul.f32 %v458_v2, %v449_v11  ;;  %v451_v17 = vmax.f32 %v446_v12, 0.0  ;;  %v1797_v2 = vld [vmem:[#allocation8 + $0x20] ss:$8 sps:$4 sm:$0xff]   ;;  %v1811_v9 = vld [vmem:[#allocation8 + $0x64] ss:$8 sps:$4 sm:$0xff]  }
 0x219   :  { %v470_v18 = vrot.slane %v466_v14, 4  ;;  %v468_v19 = vmul.f32 %v465_v13, %v450_v15  ;;  %v1809_v10 = vld [vmem:[#allocation8 + $0x60] ss:$8 sps:$4 sm:$0xff]   ;;  %v1814_v11 = vld [vmem:[#allocation8 + $0x74] ss:$8 sps:$4 sm:$0xff]  }
 0x21a   :  { %v476_v20 = vrot.slane %v467_v16, 4  ;;  %v469_v21 = vmul.f32 %v465_v13, %v451_v17  ;;  %v1812_v12 = vld [vmem:[#allocation8 + $0x70] ss:$8 sps:$4 sm:$0xff]   ;;  %v1817_v13 = vld [vmem:[#allocation8 + $0x84] ss:$8 sps:$4 sm:$0xff]  }
 0x21b   :  { %v471_v22 = vadd.f32 %v470_v18, %v466_v14  ;;  %v482_v23 = vrot.slane %v468_v19, 4  ;;  %v1815_v14 = vld [vmem:[#allocation8 + $0x80] ss:$8 sps:$4 sm:$0xff]   ;;  %v1820_v15 = vld [vmem:[#allocation8 + $0x94] ss:$8 sps:$4 sm:$0xff]  }
 0x21c   :  { %v477_v24 = vadd.f32 %v476_v20, %v467_v16  ;;  %v488_v25 = vrot.slane %v469_v21, 4  ;;  %v1818_v16 = vld [vmem:[#allocation8 + $0x90] ss:$8 sps:$4 sm:$0xff]   ;;  %v1823_v17 = vld [vmem:[#allocation8 + $0xa4] ss:$8 sps:$4 sm:$0xff]  }
 0x21d   :  { %v472_v26 = vrot.slane %v471_v22, 2  ;;  %v483_v27 = vadd.f32 %v482_v23, %v468_v19  ;;  %v1821_v18 = vld [vmem:[#allocation8 + $0xa0] ss:$8 sps:$4 sm:$0xff]   ;;  %v1826_v19 = vld [vmem:[#allocation8 + $0xb4] ss:$8 sps:$4 sm:$0xff]  }
 0x21e   :  { %v478_v28 = vrot.slane %v477_v24, 2  ;;  %v489_v29 = vadd.f32 %v488_v25, %v469_v21  ;;  %v1824_v20 = vld [vmem:[#allocation8 + $0xb0] ss:$8 sps:$4 sm:$0xff]   ;;  %v1829_v21 = vld [vmem:[#allocation8 + $0xc4] ss:$8 sps:$4 sm:$0xff]  }
 0x21f   :  { %v473_v30 = vadd.f32 %v472_v26, %v471_v22  ;;  %v484_v31 = vrot.slane %v483_v27, 2  ;;  %v1827_v22 = vld [vmem:[#allocation8 + $0xc0] ss:$8 sps:$4 sm:$0xff]   ;;  %v1832_v23 = vld [vmem:[#allocation8 + $0xd4] ss:$8 sps:$4 sm:$0xff]  }
 0x220   :  { %v479_v32 = vadd.f32 %v478_v28, %v477_v24  ;;  %v490_v33 = vrot.slane %v489_v29, 2  ;;  %v1830_v24 = vld [vmem:[#allocation8 + $0xd0] ss:$8 sps:$4 sm:$0xff]   ;;  %v2205_v28 = vpop.xlane.xlu1 %496 }
 0x221   :  { %v474_v34 = vrot.slane %v473_v30, 1  ;;  %v485_v35 = vadd.f32 %v484_v31, %v483_v27  ;;  %v534_v25 = vld [vmem:[%s2246_s7] sm:$0x3]  ;;  %vm1439_vm4 = vcmp.gt.f32.partialorder %v2205_v28, 0.0 }
 0x222   :  { %v480_v36 = vrot.slane %v479_v32, 1  ;;  %v491_v37 = vadd.f32 %v490_v33, %v489_v29  ;;  %v539_v26 = vrot.slane %v534_v25, %v2174_v40  ;;  %v543_v27 = vrot.slane %v534_v25, %v2181_v44 }
 0x223   :  { %v475_v38 = vadd.f32 %v474_v34, %v473_v30  ;;  %v486_v39 = vrot.slane %v485_v35, 1 }
 0x224   :  { %v481_v42 = vadd.f32 %v480_v36, %v479_v32  ;;  %v492_v41 = vrot.slane %v491_v37, 1  ;;  %v546_v29 = vmul.f32 %v539_v26, %v2205_v28  ;;  %v547_v30 = vmul.f32 %v543_v27, %v2205_v28 }
 0x225   :  { %v498_v43 = vpack.c.bf16 %v475_v38, %v475_v38  ;;  %v487_v45 = vadd.f32 %v486_v39, %v485_v35  ;;  %v1835_v39 = vld [vmem:[#allocation8 + $0xe4] ss:$8 sps:$4 sm:$0xff]  }
 0x226   :  { %v499_v46 = vpack.c.bf16 %v481_v42, %v481_v42  ;;  %v493_v47 = vadd.f32 %v492_v41, %v491_v37  ;;  %v1833_v42 = vld [vmem:[#allocation8 + $0xe0] ss:$8 sps:$4 sm:$0xff]   ;;  %v1838_v41 = vld [vmem:[#allocation8 + $0xf4] ss:$8 sps:$4 sm:$0xff]  }
 0x227   :  { %v500_v48 = vpack.c.bf16 %v487_v45, %v487_v45  ;;  %v552_v50 = vunpack.c.l.b16 %v498_v43  ;;  %v1836_v43 = vld [vmem:[#allocation8 + $0xf0] ss:$8 sps:$4 sm:$0xff]   ;;  %v1839_v45 = vld [vmem:[#allocation10 + $0x40] sm:$0xff]  }
 0x228   :  { %v501_v49 = vpack.c.bf16 %v493_v47, %v493_v47  ;;  %v553_v53 = vunpack.c.l.b16 %v499_v46  ;;  %v1840_v46 = vld [vmem:[#allocation10] sm:$0xff]   ;;  %v1841_v47 = vld [vmem:[#allocation10 + $0x48] sm:$0xff]   ;;  %1611 = vmatprep.subr.bf16.mxu1 %v1839_v45 }
 0x229   :  { %v554_v51 = vunpack.c.l.b16 %v500_v48  ;;  %v1842_v48 = vld [vmem:[#allocation10 + $0x8] sm:$0xff]  }
 0x22a   :  { %v555_v52 = vunpack.c.l.b16 %v501_v49  ;;  %v1843_v49 = vld [vmem:[#allocation10 + $0x50] sm:$0xff]  }
 0x22b   :  { %v557_v54 = vsel %vm556_vm3, %v554_v51, %v552_v50  ;;  %v1844_v50 = vld [vmem:[#allocation10 + $0x10] sm:$0xff]   ;;  %v1845_v51 = vld [vmem:[#allocation10 + $0x58] sm:$0xff]  }
 0x22c   :  { %v558_v55 = vsel %vm556_vm3, %v555_v52, %v553_v53  ;;  %v559_v57 = vpack.c.b16 %v557_v54, %v557_v54  ;;  %v1846_v52 = vld [vmem:[#allocation10 + $0x18] sm:$0xff]   ;;  %v1847_v53 = vld [vmem:[#allocation10 + $0x60] sm:$0xff]  }
 0x22d   :  { %v560_v56 = vpack.c.b16 %v558_v55, %v558_v55  ;;  %v1848_v54 = vld [vmem:[#allocation10 + $0x20] sm:$0xff]   ;;  %v1849_v55 = vld [vmem:[#allocation10 + $0x68] sm:$0xff]  }
 0x22f   :  { %755 = vmatprep.mubr.bf16.mxu0 %v560_v56  ;;  %v1850_v56 = vld [vmem:[#allocation10 + $0x28] sm:$0xff]  }
 0x230   :  { %756 = vmatmul.mubr.bf16.vlgmr.msra.gmra.mrb[4].mxu0 %v559_v57  ;;  %v798_v57 = vld [vmem:[%s2248_s9] sm:$0x3] }
 0x231   :  { %1220 = vmatpush1.bf16.msra.mxu0 %v1791_v60  ;;  %v803_v58 = vrot.slane %v798_v57, %v2174_v40  ;;  %v807_v59 = vrot.slane %v798_v57, %v2181_v44 }
 0x232   :  { %1221 = vmatprep.subr.bf16.mxu0 %v1796_v62 }
 0x235   :  { %1222 = vmatpush1.bf16.msra.mxu0 %v1794_v63 }
 0x236   :  { %1223 = vmatprep.subr.bf16.mxu0 %v1799_v1 }
 0x239   :  { %1224 = vmatpush1.bf16.msra.mxu0 %v1797_v2 }
 0x23a   :  { %1225 = vmatprep.subr.bf16.mxu0 %v1802_v3 }
 0x23d   :  { %1226 = vmatpush1.bf16.msra.mxu0 %v1800_v4 }
 0x23e   :  { %1227 = vmatprep.subr.bf16.mxu0 %v1805_v5 }
 0x241   :  { %1228 = vmatpush1.bf16.msra.mxu0 %v1803_v6 }
 0x242   :  { %1229 = vmatprep.subr.bf16.mxu0 %v1808_v7  ;;  %v1851_v7 = vld [vmem:[#allocation10 + $0x70] sm:$0xff]  }
 0x245   :  { %1230 = vmatpush1.bf16.msra.mxu0 %v1806_v8  ;;  %v1852_v8 = vld [vmem:[#allocation10 + $0x30] sm:$0xff]  }
 0x246   :  { %1231 = vmatprep.subr.bf16.mxu0 %v1811_v9  ;;  %v1853_v9 = vld [vmem:[#allocation10 + $0x78] sm:$0xff]  }
 0x249   :  { %1232 = vmatpush1.bf16.msra.mxu0 %v1809_v10  ;;  %v1854_v10 = vld [vmem:[#allocation10 + $0x38] sm:$0xff]  }
 0x24a   :  { %1233 = vmatprep.subr.bf16.mxu0 %v1814_v11  ;;  %v1047_v11 = vld [vmem:[%s2250_s11] sm:$0x3] }
 0x24d   :  { %1234 = vmatpush1.bf16.msra.mxu0 %v1812_v12  ;;  %v1052_v12 = vrot.slane %v1047_v11, %v2174_v40  ;;  %v1594_v40 = vld [vmem:[%s2252_s13] ss:$0 sm:$0xff] }
 0x24e   :  { %1235 = vmatprep.subr.bf16.mxu0 %v1817_v13  ;;  %v1056_v13 = vrot.slane %v1047_v11, %v2181_v44 }
 0x251   :  { %1236 = vmatpush1.bf16.msra.mxu0 %v1815_v14 }
 0x252   :  { %1237 = vmatprep.subr.bf16.mxu0 %v1820_v15 }
 0x255   :  { %1238 = vmatpush1.bf16.msra.mxu0 %v1818_v16 }
 0x256   :  { %1239 = vmatprep.subr.bf16.mxu0 %v1823_v17 }
 0x259   :  { %1240 = vmatpush1.bf16.msra.mxu0 %v1821_v18 }
 0x25a   :  { %1241 = vmatprep.subr.bf16.mxu0 %v1826_v19 }
 0x25d   :  { %1242 = vmatpush1.bf16.msra.mxu0 %v1824_v20 }
 0x25e   :  { %1243 = vmatprep.subr.bf16.mxu0 %v1829_v21 }
 0x261   :  { %1244 = vmatpush1.bf16.msra.mxu0 %v1827_v22 }
 0x262   :  { %1245 = vmatprep.subr.bf16.mxu0 %v1832_v23 }
 0x265   :  { %1246 = vmatpush1.bf16.msra.mxu0 %v1830_v24 }
 0x266   :  { %1247 = vmatprep.subr.bf16.mxu0 %v1835_v39 }
 0x269   :  { %1248 = vmatpush1.bf16.msra.mxu0 %v1833_v42 }
 0x26a   :  { %1249 = vmatprep.subr.bf16.mxu0 %v1838_v41 }
 0x26d   :  { %1250 = vmatpush1.bf16.msra.mxu0 %v1836_v43 }
 0x303   :  { %v757_v31 = vpop.f32.mrb[4].mxu0 }
 0x304   :  { %v758_v32 = vadd.f32 %v757_v31, %v546_v29  ;;  %v759_v33 = vpop.f32.mrb[5].mxu0 }
 0x305   :  { %v760_v34 = vadd.f32 %v759_v33, %v547_v30  ;;  %v761_v35 = vpop.f32.mrb[6].mxu0 }
 0x306   :  { %v762_v36 = vpop.f32.mrb[7].mxu0  ;;  %v764_v38 = vpack.c.bf16 %v758_v32, %v758_v32 }
 0x307   :  { %v765_v37 = vpack.c.bf16 %v760_v34, %v760_v34 }
 0x309   :  { %1002 = vmatprep.mubr.bf16.mxu1 %v765_v37 }
 0x30a   :  { %1003 = vmatmul.mubr.bf16.vlgmr.msra.gmra.mrb[4].mxu1 %v764_v38 }
 0x30b   :  { %1612 = vmatpush3.bf16.msra.mxu1 %v1840_v46 }
 0x30c   :  { %1613 = vmatprep.subr.bf16.mxu1 %v1841_v47 }
 0x30f   :  { %1614 = vmatpush3.bf16.msra.mxu1 %v1842_v48 }
 0x310   :  { %1615 = vmatprep.subr.bf16.mxu1 %v1843_v49 }
 0x313   :  { %1616 = vmatpush3.bf16.msra.mxu1 %v1844_v50 }
 0x314   :  { %1617 = vmatprep.subr.bf16.mxu1 %v1845_v51 }
 0x317   :  { %1618 = vmatpush3.bf16.msra.mxu1 %v1846_v52 }
 0x318   :  { %1619 = vmatprep.subr.bf16.mxu1 %v1847_v53 }
 0x31b   :  { %1620 = vmatpush3.bf16.msra.mxu1 %v1848_v54 }
 0x31c   :  { %1621 = vmatprep.subr.bf16.mxu1 %v1849_v55 }
 0x31f   :  { %1622 = vmatpush3.bf16.msra.mxu1 %v1850_v56 }
 0x320   :  { %1623 = vmatprep.subr.bf16.mxu1 %v1851_v7 }
 0x323   :  { %1624 = vmatpush3.bf16.msra.mxu1 %v1852_v8 }
 0x324   :  { %1625 = vmatprep.subr.bf16.mxu1 %v1853_v9 }
 0x327   :  { %1626 = vmatpush3.bf16.msra.mxu1 %v1854_v10 }
 0x3dd   :  { %v1004_v60 = vpop.f32.mrb[4].mxu1 }
 0x3de   :  { %v1005_v61 = vadd.f32 %v1004_v60, %v803_v58  ;;  %v1006_v62 = vpop.f32.mrb[5].mxu1 }
 0x3df   :  { %v1007_v63 = vadd.f32 %v1006_v62, %v807_v59  ;;  %v1008_v1 = vpop.f32.mrb[6].mxu1 }
 0x3e0   :  { %v1011_v2 = vpack.c.bf16 %v1005_v61, %v1005_v61  ;;  %v1009_v3 = vpop.f32.mrb[7].mxu1 }
 0x3e1   :  { %v1012_v4 = vpack.c.bf16 %v1007_v63, %v1007_v63 }
 0x3e2   :  { %v1013_v6 = vmax.bf16 %v2004_v0, %v1011_v2 }
 0x3e3   :  { %v1014_v5 = vmax.bf16 %v2004_v0, %v1012_v4 }
 0x3e5   :  { %1251 = vmatprep.mubr.bf16.mxu0 %v1014_v5 }
 0x3e6   :  { %1252 = vmatmul.mubr.bf16.vlgmr.msra.gmra.mrb[8].mxu0 %v1013_v6 }
 0x4b9   :  { %v1253_v14 = vpop.f32.mrb[8].mxu0 }
 0x4ba   :  { %v1254_v15 = vadd.f32 %v1253_v14, %v1052_v12  ;;  %v1255_v16 = vpop.f32.mrb[9].mxu0 }
 0x4bb   :  { %v1256_v17 = vadd.f32 %v1255_v16, %v1056_v13  ;;  %v1257_v18 = vpop.f32.mrb[10].mxu0 }
 0x4bc   :  { %v1260_v19 = vpack.c.bf16 %v1254_v15, %v1254_v15  ;;  %v1258_v20 = vpop.f32.mrb[11].mxu0 }
 0x4bd   :  { %v1261_v21 = vpack.c.bf16 %v1256_v17, %v1256_v17 }
 0x4be   :  { %v1262_v23 = vmax.bf16 %v2004_v0, %v1260_v19 }
 0x4bf   :  { %v1263_v22 = vmax.bf16 %v2004_v0, %v1261_v21 }
 0x4c1   :  { %1431 = vmatprep.mubr.bf16.mxu1 %v1263_v22 }
 0x4c2   :  { %1432 = vmatmul.mubr.bf16.vlgmr.msra.gmra.mrb[8].mxu1 %v1262_v23 }
 0x595   :  { %v1627_v24 = vpop.f32.mrb[8].mxu1 }
 0x596   :  { %v1628_v44 = vpop.f32.mrb[9].mxu1 }
 0x597   :  { %v1629_v25 = vadd.f32 %v1628_v44, %v1627_v24  ;;  %v1630_v26 = vpop.f32.mrb[10].mxu1 }
 0x598   :  { %v1631_v27 = vpop.f32.mrb[11].mxu1 }
 0x599   :  { %v1434_v29 = vadd.f32 %v1629_v25, %v1594_v40 }
 0x59b   :  { %v1442_v30 = vsel %vm1439_vm4, %v1434_v29, 0.0 }
 0x59c   :  { %1443 = vst [vmem:[#allocation11] sm:$0x3] %v1442_v30 }
 0x59d   :  { %1976 = shalt.err (!%p1973_p2)
}
 0x59e   :  { %s1977_s30 = scalar_lea.hbm %s2253_s14, 32 }
 0x59f   :  { %p1978_p3 = scmp.ne.s32.totalorder %s2253_s14, %s1977_s30  ;;  %p1981_p4 = scmp.lt.u32.totalorder %s1977_s30, %s2253_s14 }
 0x5a1   :  { %p1983_p5 = pnand %p1981_p4, %p1978_p3 }
 0x5a3   :  { %1986 = shalt.err (!%p1983_p5)
}
 0x5a4   :  { %1453 = dma.vmem_to_hbm [thread:$0]  %s1451_s16, 32, %s2253_s14, [#allocation4]  }
 0x5a5   :  { %1993 = dma.done.wait [#allocation4], 32  }
 0x5a6   :  { %1994 = vsyncadd [#allocation4], 4294967264 }
 0x5a7   :  { %1457 = vsyncpa [#allocation3], 1 }
 0x5a8   :  { %1458 = vsyncpa [#allocation6], 1 }
 0x5a9   :  { %1459 = vsyncpa [#allocation9], 1 }
 0x5aa   :  { %1460 = vsyncpa [#allocation4], 1 }

// kernel: tpu_custom_call.1
= control target key start
LH: loop header
LB: loop body
LE: loop exit
PB: predicated region body
PF: predicated region fallthrough
CT: control target
= control target key end

     0   :  { %19 = vsyncpa [#allocation3], 0  ;;  %s2239_s0 = inlined_call_operand.vmem [shape: bf16[16,8], index: 0, kind: input, shape index: {}]   ;;  %s2240_s1 = inlined_call_operand.vmem [shape: f32[2,8], index: 1, kind: input, shape index: {}]   ;;  %s2241_s2 = inlined_call_operand.vmem [shape: bf16[8,256], index: 2, kind: input, shape index: {}]   ;;  %s2242_s3 = inlined_call_operand.vmem [shape: f32[1,256], index: 3, kind: input, shape index: {}]   ;;  %s2243_s4 = inlined_call_operand.hbm [shape: bf16[256,256], index: 4, kind: input, shape index: {}]   ;;  %s2244_s5 = inlined_call_operand.vmem [shape: f32[1,256], index: 5, kind: input, shape index: {}]   ;;  %s2245_s6 = inlined_call_operand.hbm [shape: bf16[256,256], index: 6, kind: input, shape index: {}]   ;;  %s2246_s7 = inlined_call_operand.vmem [shape: f32[1,256], index: 7, kind: input, shape index: {}]   ;;  %s2247_s8 = inlined_call_operand.hbm [shape: bf16[256,256], index: 8, kind: input, shape index: {}]   ;;  %s2248_s9 = inlined_call_operand.vmem [shape: f32[1,256], index: 9, kind: input, shape index: {}]   ;;  %s2249_s10 = inlined_call_operand.hbm [shape: bf16[256,256], index: 10, kind: input, shape index: {}]   ;;  %s2250_s11 = inlined_call_operand.vmem [shape: f32[1,256], index: 11, kind: input, shape index: {}]   ;;  %s2251_s12 = inlined_call_operand.hbm [shape: bf16[256,128], index: 12, kind: input, shape index: {}]   ;;  %s2252_s13 = inlined_call_operand.vmem [shape: f32[1,128], index: 13, kind: input, shape index: {}]   ;;  %s2253_s14 = inlined_call_operand.hbm [shape: f32[2,128], index: 14, kind: output, shape index: {}]  }
   0x1   :  { %20 = vsyncpa [#allocation6], 0 }
   0x2   :  { %21 = vsyncpa [#allocation9], 0 }
   0x3   :  { %22 = vsyncpa [#allocation4], 0  ;;  %s1995_s29 = smov [#allocation5]   ;;  %s1996_s15 = smov [#allocation8]  }
   0x4   :  { %s50_s30 = sshll.u32 %s1995_s29, 4  ;;  %s78_s16 = sshll.u32 %s1996_s15, 4  ;;  %s51_s30 = int_to_ptr.vmem [resolvable:$true] %s50_s30  ;;  %s2081_s16 = int_to_ptr.vmem [resolvable:$true] %s78_s16 }
   0x5   :  { %s1855_s19 = scalar_lea.hbm %s2245_s6, 4096 }
   0x6   :  { %p1856_p0 = scmp.ne.s32.totalorder %s2245_s6, %s1855_s19  ;;  %p1859_p1 = scmp.lt.u32.totalorder %s1855_s19, %s2245_s6 }
   0x8   :  { %p1861_p2 = pnand %p1859_p1, %p1856_p0 }
   0xa   :  { %1864 = shalt.err (!%p1861_p2)
}
   0xb   :  { %s1865_s24 = scalar_lea.vmem %s51_s30, 4096  ;;  %p1870_p4 = scmp.lt.s32.totalorder %s51_s30, %s51_s30 }
   0xc   :  { %p1866_p3 = scmp.ne.s32.totalorder %s51_s30, %s1865_s24  ;;  %p1871_p5 = scmp.lt.s32.totalorder %s1865_s24, %s1865_s24 }
   0xe   :  { %p1872_p6 = por %p1871_p5, %p1870_p4 }
  0x10   :  { %p1873_p7 = pnand %p1872_p6, %p1866_p3 }
  0x12   :  { %1876 = shalt.err (!%p1873_p7)
}
  0x13   :  { %s1997_s25 = smov 128   ;;  %s1998_s26 = smov 8  }
  0x14   :  { %56 = dma.hbm_to_vmem [thread:$0]  %s2245_s6, 4096, %s51_s30, [#allocation6], %s1997_s25, %s1997_s25, %s1998_s26  }
  0x15   :  { %s1877_s17 = scalar_lea.hbm %s2249_s10, 4096 }
  0x16   :  { %p1878_p8 = scmp.ne.s32.totalorder %s2249_s10, %s1877_s17  ;;  %p1881_p9 = scmp.lt.u32.totalorder %s1877_s17, %s2249_s10 }
  0x18   :  { %p1883_p10 = pnand %p1881_p9, %p1878_p8 }
  0x1a   :  { %1886 = shalt.err (!%p1883_p10)
}
  0x1b   :  { %s1887_s22 = scalar_lea.vmem %s2081_s16, 4096  ;;  %p1892_p12 = scmp.lt.s32.totalorder %s2081_s16, %s2081_s16 }
  0x1c   :  { %p1888_p11 = scmp.ne.s32.totalorder %s2081_s16, %s1887_s22  ;;  %p1893_p13 = scmp.lt.s32.totalorder %s1887_s22, %s1887_s22 }
  0x1e   :  { %p1894_p0 = por %p1893_p13, %p1892_p12 }
  0x20   :  { %p1895_p1 = pnand %p1894_p0, %p1888_p11 }
  0x22   :  { %1898 = shalt.err (!%p1895_p1)
}
  0x23   :  { %84 = dma.hbm_to_vmem [thread:$0]  %s2249_s10, 4096, %s2081_s16, [#allocation9], %s1997_s25, %s1997_s25, %s1998_s26  }
  0x24   :  { %s1999_s23 = smov [#allocation2]   ;;  %s2000_s27 = smov [#allocation7]  }
  0x25   :  { %s36_s24 = sshll.u32 %s1999_s23, 4  ;;  %s64_s28 = sshll.u32 %s2000_s27, 4  ;;  %s37_s24 = int_to_ptr.vmem [resolvable:$true] %s36_s24  ;;  %s2118_s28 = int_to_ptr.vmem [resolvable:$true] %s64_s28 }
  0x26   :  { %s1899_s17 = scalar_lea.hbm %s2243_s4, 4096 }
  0x27   :  { %p1900_p2 = scmp.ne.s32.totalorder %s2243_s4, %s1899_s17  ;;  %p1903_p3 = scmp.lt.u32.totalorder %s1899_s17, %s2243_s4 }
  0x29   :  { %p1905_p4 = pnand %p1903_p3, %p1900_p2 }
  0x2b   :  { %1908 = shalt.err (!%p1905_p4)
}
  0x2c   :  { %s1909_s10 = scalar_lea.vmem %s37_s24, 4096  ;;  %p1914_p6 = scmp.lt.s32.totalorder %s37_s24, %s37_s24 }
  0x2d   :  { %p1910_p5 = scmp.ne.s32.totalorder %s37_s24, %s1909_s10  ;;  %p1915_p7 = scmp.lt.s32.totalorder %s1909_s10, %s1909_s10 }
  0x2f   :  { %p1916_p8 = por %p1915_p7, %p1914_p6 }
  0x31   :  { %p1917_p9 = pnand %p1916_p8, %p1910_p5 }
  0x33   :  { %1920 = shalt.err (!%p1917_p9)
}
  0x34   :  { %42 = dma.hbm_to_vmem [thread:$0]  %s2243_s4, 4096, %s37_s24, [#allocation3], %s1997_s25, %s1997_s25, %s1998_s26  }
  0x35   :  { %s1921_s23 = scalar_lea.hbm %s2247_s8, 4096 }
  0x36   :  { %p1922_p10 = scmp.ne.s32.totalorder %s2247_s8, %s1921_s23  ;;  %p1925_p11 = scmp.lt.u32.totalorder %s1921_s23, %s2247_s8 }
  0x38   :  { %p1927_p12 = pnand %p1925_p11, %p1922_p10 }
  0x3a   :  { %1930 = shalt.err (!%p1927_p12)
}
  0x3b   :  { %s1931_s18 = scalar_lea.vmem %s2118_s28, 4096  ;;  %p1936_p0 = scmp.lt.s32.totalorder %s2118_s28, %s2118_s28 }
  0x3c   :  { %p1932_p13 = scmp.ne.s32.totalorder %s2118_s28, %s1931_s18  ;;  %p1937_p1 = scmp.lt.s32.totalorder %s1931_s18, %s1931_s18 }
  0x3e   :  { %p1938_p2 = por %p1937_p1, %p1936_p0 }
  0x40   :  { %p1939_p3 = pnand %p1938_p2, %p1932_p13 }
  0x42   :  { %1942 = shalt.err (!%p1939_p3)
}
  0x43   :  { %70 = dma.hbm_to_vmem [thread:$0]  %s2247_s8, 4096, %s2118_s28, [#allocation6], %s1997_s25, %s1997_s25, %s1998_s26  }
  0x44   :  { %s2001_s19 = smov [#allocation10]   ;;  %s1943_s16 = scalar_lea.hbm %s2251_s12, 2048 }
  0x45   :  { %s92_s20 = sshll.u32 %s2001_s19, 4  ;;  %p1944_p4 = scmp.ne.s32.totalorder %s2251_s12, %s1943_s16  ;;  %s93_s20 = int_to_ptr.vmem [resolvable:$true] %s92_s20 }
  0x46   :  { %p1947_p5 = scmp.lt.u32.totalorder %s1943_s16, %s2251_s12 }
  0x48   :  { %p1949_p6 = pnand %p1947_p5, %p1944_p4 }
  0x4a   :  { %1952 = shalt.err (!%p1949_p6)
}
  0x4b   :  { %s1953_s27 = scalar_lea.vmem %s93_s20, 2048  ;;  %p1958_p8 = scmp.lt.s32.totalorder %s93_s20, %s93_s20 }
  0x4c   :  { %p1954_p7 = scmp.ne.s32.totalorder %s93_s20, %s1953_s27  ;;  %p1959_p9 = scmp.lt.s32.totalorder %s1953_s27, %s1953_s27 }
  0x4e   :  { %p1960_p10 = por %p1959_p9, %p1958_p8 }
  0x50   :  { %p1961_p11 = pnand %p1960_p10, %p1954_p7 }
  0x52   :  { %1964 = shalt.err (!%p1961_p11)
}
  0x53   :  { %s2002_s8 = smov 64   ;;  %s2003_s25 = smov 4  }
  0x54   :  { %98 = dma.hbm_to_vmem [thread:$0]  %s2251_s12, 2048, %s93_s20, [#allocation9], %s2002_s8, %s2002_s8, %s2003_s25  }
  0x55   :  { %1987 = dma.done.wait [#allocation3], 4096  }
  0x56   :  { %1988 = vsyncadd [#allocation3], 4294963200 }
  0x57   :  { %1989 = dma.done.wait [#allocation6], 8192  }
  0x58   :  { %1990 = vsyncadd [#allocation6], 4294959104 }
  0x59   :  { %1991 = dma.done.wait [#allocation9], 6144  }
  0x5a   :  { %1992 = vsyncadd [#allocation9], 4294961152  ;;  %v2004_v0 = vmov 0   ;;  %v120_v1 = vld [vmem:[%s2241_s2] sm:$0xff]  ;;  %vm147_vm0 = vcmask 1043456   ;;  %vm143_vm1 = vcmask 64512   ;;  %v123_v35 = vlaneseq }
  0x5b   :  { %186 = vmatprep.mubr.bf16.mxu0 %v2004_v0  ;;  %v1463_v2 = vcombine.high %v120_v1, %v120_v1  ;;  %v1462_v3 = vcombine.low %v120_v1, %v120_v1  ;;  %v1647_v4 = vld [vmem:[#allocation2 + $0x4] ss:$8 sps:$4 sm:$0xff]   ;;  %v1649_v5 = vld [vmem:[#allocation2] ss:$8 sps:$4 sm:$0xff]   ;;  %v1646_v7 = vld [vmem:[%s2239_s0] sm:$0xff]   ;;  %vm494_vm2 = vcmask 58368  }
  0x5c   :  { %v1650_v8 = vld [vmem:[#allocation2 + $0x14] ss:$8 sps:$4 sm:$0xff]   ;;  %405 = vmatprep.subr.bf16.mxu1 %v1647_v4  ;;  %v1652_v9 = vld [vmem:[#allocation2 + $0x10] ss:$8 sps:$4 sm:$0xff]   ;;  %v1653_v10 = vld [vmem:[#allocation2 + $0x24] ss:$8 sps:$4 sm:$0xff]  }
  0x5d   :  { %1464 = vmatprep.subr.msk.bf16.mxu0 %vm147_vm0, %v1463_v2  ;;  %v149_v6 = vsel %vm147_vm0, %v1462_v3, 0  ;;  %406 = vmatpush1.bf16.msra.mxu1 %v1649_v5  ;;  %v1655_v11 = vld [vmem:[#allocation2 + $0x20] ss:$8 sps:$4 sm:$0xff]   ;;  %v1656_v12 = vld [vmem:[#allocation2 + $0x34] ss:$8 sps:$4 sm:$0xff]   ;;  %v124_v39 = vshrl.u32 %v123_v35, 7 }
  0x5e   :  { %155 = vmatpush1.bf16.msra.mxu0 %v149_v6  ;;  %407 = vmatprep.subr.bf16.mxu1 %v1650_v8  ;;  %v1658_v13 = vld [vmem:[#allocation2 + $0x30] ss:$8 sps:$4 sm:$0xff]   ;;  %v1659_v14 = vld [vmem:[#allocation2 + $0x44] ss:$8 sps:$4 sm:$0xff]   ;;  %v1661_v15 = vld [vmem:[#allocation2 + $0x40] ss:$8 sps:$4 sm:$0xff]  }
  0x5f   :  { %v1662_v16 = vld [vmem:[#allocation2 + $0x54] ss:$8 sps:$4 sm:$0xff]   ;;  %v1664_v17 = vld [vmem:[#allocation2 + $0x50] ss:$8 sps:$4 sm:$0xff]   ;;  %v1665_v18 = vld [vmem:[#allocation2 + $0x64] ss:$8 sps:$4 sm:$0xff]  }
  0x60   :  { %v1667_v19 = vld [vmem:[#allocation2 + $0x60] ss:$8 sps:$4 sm:$0xff]   ;;  %v1668_v20 = vld [vmem:[#allocation2 + $0x74] ss:$8 sps:$4 sm:$0xff]   ;;  %v1670_v21 = vld [vmem:[#allocation2 + $0x70] ss:$8 sps:$4 sm:$0xff]  }
  0x61   :  { %1465 = vmatmul.mubr.msk.bf16.vlgmr.msra.gmra.mrb[0].mxu0 %vm143_vm1, %v1646_v7  ;;  %408 = vmatpush1.bf16.msra.mxu1 %v1652_v9  ;;  %v1671_v22 = vld [vmem:[#allocation2 + $0x84] ss:$8 sps:$4 sm:$0xff]   ;;  %v1673_v23 = vld [vmem:[#allocation2 + $0x80] ss:$8 sps:$4 sm:$0xff]   ;;  %v1674_v24 = vld [vmem:[#allocation2 + $0x94] ss:$8 sps:$4 sm:$0xff]  }
  0x62   :  { %409 = vmatprep.subr.bf16.mxu1 %v1653_v10  ;;  %v1676_v25 = vld [vmem:[#allocation2 + $0x90] ss:$8 sps:$4 sm:$0xff]   ;;  %v1677_v26 = vld [vmem:[#allocation2 + $0xa4] ss:$8 sps:$4 sm:$0xff]   ;;  %v1679_v27 = vld [vmem:[#allocation2 + $0xa0] ss:$8 sps:$4 sm:$0xff]  }
  0x63   :  { %v1680_v28 = vld [vmem:[#allocation2 + $0xb4] ss:$8 sps:$4 sm:$0xff]   ;;  %v1682_v29 = vld [vmem:[#allocation2 + $0xb0] ss:$8 sps:$4 sm:$0xff]   ;;  %v1683_v30 = vld [vmem:[#allocation2 + $0xc4] ss:$8 sps:$4 sm:$0xff]  }
  0x64   :  { %v1685_v31 = vld [vmem:[#allocation2 + $0xc0] ss:$8 sps:$4 sm:$0xff]   ;;  %v1686_v32 = vld [vmem:[#allocation2 + $0xd4] ss:$8 sps:$4 sm:$0xff]   ;;  %v1688_v33 = vld [vmem:[#allocation2 + $0xd0] ss:$8 sps:$4 sm:$0xff]  }
  0x65   :  { %410 = vmatpush1.bf16.msra.mxu1 %v1655_v11  ;;  %v1689_v34 = vld [vmem:[#allocation2 + $0xe4] ss:$8 sps:$4 sm:$0xff]   ;;  %v1691_v36 = vld [vmem:[#allocation2 + $0xe0] ss:$8 sps:$4 sm:$0xff]   ;;  %v1692_v37 = vld [vmem:[#allocation2 + $0xf4] ss:$8 sps:$4 sm:$0xff]  }
  0x66   :  { %411 = vmatprep.subr.bf16.mxu1 %v1656_v12  ;;  %v1694_v38 = vld [vmem:[#allocation2 + $0xf0] ss:$8 sps:$4 sm:$0xff]   ;;  %v2174_v40 = vsub.s32 0, %v124_v39  ;;  %v1695_v42 = vld [vmem:[#allocation5] ss:$8 sps:$4 sm:$0xff]   ;;  %v2181_v44 = vsub.s32 1, %v124_v39 }
  0x67   :  { %v2179_v41 = vld [vmem:[%s2240_s1] sm:$0x3]  ;;  %v1697_v43 = vld [vmem:[#allocation5 + $0x4] ss:$8 sps:$4 sm:$0xff]   ;;  %v1700_v46 = vld [vmem:[#allocation5 + $0x14] ss:$8 sps:$4 sm:$0xff]  }
  0x68   :  { %v455_v45 = vrot.slane %v2179_v41, %v2174_v40  ;;  %723 = vmatprep.subr.bf16.mxu0 %v1697_v43  ;;  %v462_v47 = vrot.slane %v2179_v41, %v2181_v44  ;;  %v1698_v48 = vld [vmem:[#allocation5 + $0x10] ss:$8 sps:$4 sm:$0xff]   ;;  %v1703_v49 = vld [vmem:[#allocation5 + $0x24] ss:$8 sps:$4 sm:$0xff]   ;;  %v1701_v50 = vld [vmem:[#allocation5 + $0x20] ss:$8 sps:$4 sm:$0xff]  }
  0x69   :  { %412 = vmatpush1.bf16.msra.mxu1 %v1658_v13  ;;  %724 = vmatpush1.bf16.msra.mxu0 %v1695_v42  ;;  %v1706_v51 = vld [vmem:[#allocation5 + $0x34] ss:$8 sps:$4 sm:$0xff]   ;;  %v1704_v52 = vld [vmem:[#allocation5 + $0x30] ss:$8 sps:$4 sm:$0xff]   ;;  %v1709_v53 = vld [vmem:[#allocation5 + $0x44] ss:$8 sps:$4 sm:$0xff]  }
  0x6a   :  { %413 = vmatprep.subr.bf16.mxu1 %v1659_v14  ;;  %457 = vbcast.lane.b32.xlu0 %v455_v45, 256  ;;  %v1707_v54 = vld [vmem:[#allocation5 + $0x40] ss:$8 sps:$4 sm:$0xff]   ;;  %v1712_v55 = vld [vmem:[#allocation5 + $0x54] ss:$8 sps:$4 sm:$0xff]   ;;  %vm556_vm3 = vcmask 1041409  }
  0x6b   :  { %725 = vmatprep.subr.bf16.mxu0 %v1700_v46  ;;  %v1710_v56 = vld [vmem:[#allocation5 + $0x50] ss:$8 sps:$4 sm:$0xff]   ;;  %v1715_v57 = vld [vmem:[#allocation5 + $0x64] ss:$8 sps:$4 sm:$0xff]   ;;  %v1713_v58 = vld [vmem:[#allocation5 + $0x60] ss:$8 sps:$4 sm:$0xff]  }
  0x6c   :  { %v1718_v59 = vld [vmem:[#allocation5 + $0x74] ss:$8 sps:$4 sm:$0xff]   ;;  %v1716_v60 = vld [vmem:[#allocation5 + $0x70] ss:$8 sps:$4 sm:$0xff]   ;;  %v1721_v61 = vld [vmem:[#allocation5 + $0x84] ss:$8 sps:$4 sm:$0xff]  }
  0x6d   :  { %414 = vmatpush1.bf16.msra.mxu1 %v1661_v15  ;;  %726 = vmatpush1.bf16.msra.mxu0 %v1698_v48  ;;  %v1719_v62 = vld [vmem:[#allocation5 + $0x80] ss:$8 sps:$4 sm:$0xff]   ;;  %v121_v63 = vld [vmem:[%s2242_s3] sm:$0x3]  ;;  %v1724_v15 = vld [vmem:[#allocation5 + $0x94] ss:$8 sps:$4 sm:$0xff]  }
  0x6e   :  { %415 = vmatprep.subr.bf16.mxu1 %v1662_v16  ;;  %464 = vbcast.lane.b32.xlu0 %v462_v47, 256  ;;  %v126_v1 = vrot.slane %v121_v63, %v2174_v40  ;;  %v130_v3 = vrot.slane %v121_v63, %v2181_v44  ;;  %v1722_v16 = vld [vmem:[#allocation5 + $0x90] ss:$8 sps:$4 sm:$0xff]   ;;  %v1749_v35 = vld [vmem:[#allocation7 + $0x20] ss:$8 sps:$4 sm:$0xff]   ;;  %s2005_s10 = smov [#allocation11]  }
  0x6f   :  { %727 = vmatprep.subr.bf16.mxu0 %v1703_v49  ;;  %v1755_v39 = vld [vmem:[#allocation7 + $0x40] ss:$8 sps:$4 sm:$0xff]   ;;  %v1760_v42 = vld [vmem:[#allocation7 + $0x54] ss:$8 sps:$4 sm:$0xff]   ;;  %v1763_v43 = vld [vmem:[#allocation7 + $0x64] ss:$8 sps:$4 sm:$0xff]  }
  0x70   :  { %v1761_v45 = vld [vmem:[#allocation7 + $0x60] ss:$8 sps:$4 sm:$0xff]   ;;  %v1766_v46 = vld [vmem:[#allocation7 + $0x74] ss:$8 sps:$4 sm:$0xff]   ;;  %v1764_v47 = vld [vmem:[#allocation7 + $0x70] ss:$8 sps:$4 sm:$0xff]  }
  0x71   :  { %416 = vmatpush1.bf16.msra.mxu1 %v1664_v17  ;;  %728 = vmatpush1.bf16.msra.mxu0 %v1701_v50  ;;  %v1727_v17 = vld [vmem:[#allocation5 + $0xa4] ss:$8 sps:$4 sm:$0xff]   ;;  %v1767_v49 = vld [vmem:[#allocation7 + $0x80] ss:$8 sps:$4 sm:$0xff]   ;;  %v1772_v50 = vld [vmem:[#allocation7 + $0x94] ss:$8 sps:$4 sm:$0xff]  }
  0x72   :  { %417 = vmatprep.subr.bf16.mxu1 %v1665_v18  ;;  %729 = vmatprep.subr.bf16.mxu0 %v1706_v51  ;;  %v1725_v18 = vld [vmem:[#allocation5 + $0xa0] ss:$8 sps:$4 sm:$0xff]   ;;  %v1769_v48 = vld [vmem:[#allocation7 + $0x84] ss:$8 sps:$4 sm:$0xff]   ;;  %v1770_v51 = vld [vmem:[#allocation7 + $0x90] ss:$8 sps:$4 sm:$0xff]  }
  0x73   :  { %s1450_s16 = sshll.u32 %s2005_s10, 4  ;;  %s1451_s16 = int_to_ptr.vmem [resolvable:$true] %s1450_s16 }
  0x74   :  { %s1965_s22 = scalar_lea.vmem %s1451_s16, 32  ;;  %p1970_p13 = scmp.lt.s32.totalorder %s1451_s16, %s1451_s16 }
  0x75   :  { %418 = vmatpush1.bf16.msra.mxu1 %v1667_v19  ;;  %730 = vmatpush1.bf16.msra.mxu0 %v1704_v52  ;;  %v1730_v19 = vld [vmem:[#allocation5 + $0xb4] ss:$8 sps:$4 sm:$0xff]   ;;  %v1775_v52 = vld [vmem:[#allocation7 + $0xa4] ss:$8 sps:$4 sm:$0xff]   ;;  %p1966_p12 = scmp.ne.s32.totalorder %s1451_s16, %s1965_s22  ;;  %p1971_p0 = scmp.lt.s32.totalorder %s1965_s22, %s1965_s22 }
  0x76   :  { %419 = vmatprep.subr.bf16.mxu1 %v1668_v20  ;;  %731 = vmatprep.subr.bf16.mxu0 %v1709_v53  ;;  %v1728_v20 = vld [vmem:[#allocation5 + $0xb0] ss:$8 sps:$4 sm:$0xff]   ;;  %v1773_v53 = vld [vmem:[#allocation7 + $0xa0] ss:$8 sps:$4 sm:$0xff]  }
  0x77   :  { %p1972_p1 = por %p1971_p0, %p1970_p13 }
  0x79   :  { %420 = vmatpush1.bf16.msra.mxu1 %v1670_v21  ;;  %732 = vmatpush1.bf16.msra.mxu0 %v1707_v54  ;;  %v1733_v21 = vld [vmem:[#allocation5 + $0xc4] ss:$8 sps:$4 sm:$0xff]   ;;  %v1778_v54 = vld [vmem:[#allocation7 + $0xb4] ss:$8 sps:$4 sm:$0xff]   ;;  %p1973_p2 = pnand %p1972_p1, %p1966_p12 }
  0x7a   :  { %421 = vmatprep.subr.bf16.mxu1 %v1671_v22  ;;  %733 = vmatprep.subr.bf16.mxu0 %v1712_v55  ;;  %v1731_v22 = vld [vmem:[#allocation5 + $0xc0] ss:$8 sps:$4 sm:$0xff]   ;;  %v1776_v55 = vld [vmem:[#allocation7 + $0xb0] ss:$8 sps:$4 sm:$0xff]  }
  0x7d   :  { %422 = vmatpush1.bf16.msra.mxu1 %v1673_v23  ;;  %734 = vmatpush1.bf16.msra.mxu0 %v1710_v56  ;;  %v1736_v23 = vld [vmem:[#allocation5 + $0xd4] ss:$8 sps:$4 sm:$0xff]   ;;  %v1781_v56 = vld [vmem:[#allocation7 + $0xc4] ss:$8 sps:$4 sm:$0xff]  }
  0x7e   :  { %423 = vmatprep.subr.bf16.mxu1 %v1674_v24  ;;  %735 = vmatprep.subr.bf16.mxu0 %v1715_v57  ;;  %v1734_v24 = vld [vmem:[#allocation5 + $0xd0] ss:$8 sps:$4 sm:$0xff]   ;;  %v1779_v57 = vld [vmem:[#allocation7 + $0xc0] ss:$8 sps:$4 sm:$0xff]  }
  0x81   :  { %424 = vmatpush1.bf16.msra.mxu1 %v1676_v25  ;;  %736 = vmatpush1.bf16.msra.mxu0 %v1713_v58  ;;  %v1739_v25 = vld [vmem:[#allocation5 + $0xe4] ss:$8 sps:$4 sm:$0xff]   ;;  %v1784_v58 = vld [vmem:[#allocation7 + $0xd4] ss:$8 sps:$4 sm:$0xff]  }
  0x82   :  { %425 = vmatprep.subr.bf16.mxu1 %v1677_v26  ;;  %737 = vmatprep.subr.bf16.mxu0 %v1718_v59  ;;  %v1737_v26 = vld [vmem:[#allocation5 + $0xe0] ss:$8 sps:$4 sm:$0xff]   ;;  %v1782_v59 = vld [vmem:[#allocation7 + $0xd0] ss:$8 sps:$4 sm:$0xff]  }
  0x85   :  { %426 = vmatpush1.bf16.msra.mxu1 %v1679_v27  ;;  %738 = vmatpush1.bf16.msra.mxu0 %v1716_v60  ;;  %v1740_v27 = vld [vmem:[#allocation5 + $0xf0] ss:$8 sps:$4 sm:$0xff]   ;;  %v1787_v60 = vld [vmem:[#allocation7 + $0xe4] ss:$8 sps:$4 sm:$0xff]  }
  0x86   :  { %427 = vmatprep.subr.bf16.mxu1 %v1680_v28  ;;  %739 = vmatprep.subr.bf16.mxu0 %v1721_v61  ;;  %v1742_v28 = vld [vmem:[#allocation5 + $0xf4] ss:$8 sps:$4 sm:$0xff]   ;;  %v1785_v61 = vld [vmem:[#allocation7 + $0xe0] ss:$8 sps:$4 sm:$0xff]  }
  0x89   :  { %428 = vmatpush1.bf16.msra.mxu1 %v1682_v29  ;;  %740 = vmatpush1.bf16.msra.mxu0 %v1719_v62  ;;  %v1743_v29 = vld [vmem:[#allocation7] ss:$8 sps:$4 sm:$0xff]   ;;  %v233_v62 = vld [vmem:[%s2244_s5] sm:$0x3] }
  0x8a   :  { %429 = vmatprep.subr.bf16.mxu1 %v1683_v30  ;;  %741 = vmatprep.subr.bf16.mxu0 %v1724_v15  ;;  %v1745_v30 = vld [vmem:[#allocation7 + $0x4] ss:$8 sps:$4 sm:$0xff]   ;;  %v238_v63 = vrot.slane %v233_v62, %v2174_v40 }
  0x8d   :  { %430 = vmatpush1.bf16.msra.mxu1 %v1685_v31  ;;  %742 = vmatpush1.bf16.msra.mxu0 %v1722_v16  ;;  %v495_v31 = vsel %vm494_vm2, %v2179_v41, 0.0  ;;  %v1758_v41 = vld [vmem:[#allocation7 + $0x50] ss:$8 sps:$4 sm:$0xff]  }
  0x8e   :  { %431 = vmatprep.subr.bf16.mxu1 %v1686_v32  ;;  %743 = vmatprep.subr.bf16.mxu0 %v1727_v17  ;;  %v1748_v32 = vld [vmem:[#allocation7 + $0x14] ss:$8 sps:$4 sm:$0xff]  }
  0x8f   :  { %496 = vadd.xlane.f32.xlu1 %v495_v31 }
  0x91   :  { %432 = vmatpush1.bf16.msra.mxu1 %v1688_v33  ;;  %744 = vmatpush1.bf16.msra.mxu0 %v1725_v18  ;;  %v1746_v33 = vld [vmem:[#allocation7 + $0x10] ss:$8 sps:$4 sm:$0xff]  }
  0x92   :  { %433 = vmatprep.subr.bf16.mxu1 %v1689_v34  ;;  %745 = vmatprep.subr.bf16.mxu0 %v1730_v19  ;;  %v1751_v34 = vld [vmem:[#allocation7 + $0x24] ss:$8 sps:$4 sm:$0xff]  }
  0x95   :  { %434 = vmatpush1.bf16.msra.mxu1 %v1691_v36  ;;  %746 = vmatpush1.bf16.msra.mxu0 %v1728_v20  ;;  %v1754_v36 = vld [vmem:[#allocation7 + $0x34] ss:$8 sps:$4 sm:$0xff]  }
  0x96   :  { %435 = vmatprep.subr.bf16.mxu1 %v1692_v37  ;;  %747 = vmatprep.subr.bf16.mxu0 %v1733_v21  ;;  %v1752_v37 = vld [vmem:[#allocation7 + $0x30] ss:$8 sps:$4 sm:$0xff]  }
  0x99   :  { %436 = vmatpush1.bf16.msra.mxu1 %v1694_v38  ;;  %748 = vmatpush1.bf16.msra.mxu0 %v1731_v22  ;;  %v1757_v38 = vld [vmem:[#allocation7 + $0x44] ss:$8 sps:$4 sm:$0xff]  }
  0x9a   :  { %749 = vmatprep.subr.bf16.mxu0 %v1736_v23  ;;  %970 = vmatprep.subr.bf16.mxu1 %v1745_v30 }
  0x9d   :  { %750 = vmatpush1.bf16.msra.mxu0 %v1734_v24 }
  0x9e   :  { %751 = vmatprep.subr.bf16.mxu0 %v1739_v25 }
  0xa1   :  { %752 = vmatpush1.bf16.msra.mxu0 %v1737_v26 }
  0xa2   :  { %753 = vmatprep.subr.bf16.mxu0 %v1742_v28 }
  0xa5   :  { %754 = vmatpush1.bf16.msra.mxu0 %v1740_v27 }
 0x134   :  { %v188_v2 = vpop.f32.mrb[0].mxu0 }
 0x135   :  { %v190_v4 = vpop.f32.mrb[1].mxu0  ;;  %v189_v6 = vadd.f32 %v188_v2, %v126_v1  ;;  %v458_v2 = vpop.permute.xlu0 %457 }
 0x136   :  { %v192_v5 = vpop.f32.mrb[2].mxu0  ;;  %v191_v9 = vadd.f32 %v190_v4, %v130_v3 }
 0x137   :  { %v193_v7 = vadd.f32 %v192_v5, %v126_v1  ;;  %v194_v8 = vpop.f32.mrb[3].mxu0  ;;  %v242_v1 = vrot.slane %v233_v62, %v2181_v44  ;;  %v1796_v62 = vld [vmem:[#allocation8 + $0x14] ss:$8 sps:$4 sm:$0xff]  }
 0x138   :  { %v195_v10 = vadd.f32 %v194_v8, %v130_v3 }
 0x139   :  { %v197_v11 = vpack.c.bf16 %v193_v7, %v189_v6 }
 0x13a   :  { %v198_v12 = vpack.c.bf16 %v195_v10, %v191_v9 }
 0x13b   :  { %v199_v14 = vmax.bf16 %v2004_v0, %v197_v11 }
 0x13c   :  { %v200_v13 = vmax.bf16 %v2004_v0, %v198_v12 }
 0x13e   :  { %437 = vmatprep.mubr.bf16.mxu1 %v200_v13  ;;  %v465_v13 = vpop.permute.xlu0 %464 }
 0x13f   :  { %438 = vmatmul.mubr.bf16.vlgmr.msra.gmra.mrb[0].mxu1 %v199_v14 }
 0x140   :  { %971 = vmatpush1.bf16.msra.mxu1 %v1743_v29 }
 0x141   :  { %972 = vmatprep.subr.bf16.mxu1 %v1748_v32 }
 0x144   :  { %973 = vmatpush1.bf16.msra.mxu1 %v1746_v33 }
 0x145   :  { %974 = vmatprep.subr.bf16.mxu1 %v1751_v34 }
 0x148   :  { %975 = vmatpush1.bf16.msra.mxu1 %v1749_v35 }
 0x149   :  { %976 = vmatprep.subr.bf16.mxu1 %v1754_v36 }
 0x14c   :  { %977 = vmatpush1.bf16.msra.mxu1 %v1752_v37 }
 0x14d   :  { %978 = vmatprep.subr.bf16.mxu1 %v1757_v38 }
 0x150   :  { %979 = vmatpush1.bf16.msra.mxu1 %v1755_v39 }
 0x151   :  { %980 = vmatprep.subr.bf16.mxu1 %v1760_v42 }
 0x154   :  { %981 = vmatpush1.bf16.msra.mxu1 %v1758_v41 }
 0x155   :  { %982 = vmatprep.subr.bf16.mxu1 %v1763_v43 }
 0x158   :  { %983 = vmatpush1.bf16.msra.mxu1 %v1761_v45 }
 0x159   :  { %984 = vmatprep.subr.bf16.mxu1 %v1766_v46 }
 0x15c   :  { %985 = vmatpush1.bf16.msra.mxu1 %v1764_v47 }
 0x15d   :  { %986 = vmatprep.subr.bf16.mxu1 %v1769_v48 }
 0x160   :  { %987 = vmatpush1.bf16.msra.mxu1 %v1767_v49 }
 0x161   :  { %988 = vmatprep.subr.bf16.mxu1 %v1772_v50 }
 0x164   :  { %989 = vmatpush1.bf16.msra.mxu1 %v1770_v51 }
 0x165   :  { %990 = vmatprep.subr.bf16.mxu1 %v1775_v52 }
 0x168   :  { %991 = vmatpush1.bf16.msra.mxu1 %v1773_v53 }
 0x169   :  { %992 = vmatprep.subr.bf16.mxu1 %v1778_v54 }
 0x16c   :  { %993 = vmatpush1.bf16.msra.mxu1 %v1776_v55 }
 0x16d   :  { %994 = vmatprep.subr.bf16.mxu1 %v1781_v56 }
 0x170   :  { %995 = vmatpush1.bf16.msra.mxu1 %v1779_v57 }
 0x171   :  { %996 = vmatprep.subr.bf16.mxu1 %v1784_v58  ;;  %v1790_v58 = vld [vmem:[#allocation7 + $0xf4] ss:$8 sps:$4 sm:$0xff]  }
 0x174   :  { %997 = vmatpush1.bf16.msra.mxu1 %v1782_v59  ;;  %v1788_v59 = vld [vmem:[#allocation7 + $0xf0] ss:$8 sps:$4 sm:$0xff]  }
 0x175   :  { %998 = vmatprep.subr.bf16.mxu1 %v1787_v60  ;;  %v1791_v60 = vld [vmem:[#allocation8] ss:$8 sps:$4 sm:$0xff]  }
 0x178   :  { %999 = vmatpush1.bf16.msra.mxu1 %v1785_v61  ;;  %v1793_v61 = vld [vmem:[#allocation8 + $0x4] ss:$8 sps:$4 sm:$0xff]  }
 0x179   :  { %1000 = vmatprep.subr.bf16.mxu1 %v1790_v58  ;;  %1219 = vmatprep.subr.bf16.mxu0 %v1793_v61 }
 0x17c   :  { %1001 = vmatpush1.bf16.msra.mxu1 %v1788_v59 }
 0x212   :  { %v439_v3 = vpop.f32.mrb[0].mxu1 }
 0x213   :  { %v440_v4 = vadd.f32 %v439_v3, %v238_v63  ;;  %v441_v5 = vpop.f32.mrb[1].mxu1  ;;  %v1802_v3 = vld [vmem:[#allocation8 + $0x34] ss:$8 sps:$4 sm:$0xff]  }
 0x214   :  { %v442_v6 = vadd.f32 %v441_v5, %v242_v1  ;;  %v443_v7 = vpop.f32.mrb[2].mxu1  ;;  %v1805_v5 = vld [vmem:[#allocation8 + $0x44] ss:$8 sps:$4 sm:$0xff]  }
 0x215   :  { %v448_v8 = vmax.f32 %v440_v4, 0.0  ;;  %v444_v9 = vadd.f32 %v443_v7, %v238_v63  ;;  %v445_v10 = vpop.f32.mrb[3].mxu1  ;;  %v1794_v63 = vld [vmem:[#allocation8 + $0x10] ss:$8 sps:$4 sm:$0xff]   ;;  %v1808_v7 = vld [vmem:[#allocation8 + $0x54] ss:$8 sps:$4 sm:$0xff]  }
 0x216   :  { %v449_v11 = vmax.f32 %v442_v6, 0.0  ;;  %v446_v12 = vadd.f32 %v445_v10, %v242_v1  ;;  %v1799_v1 = vld [vmem:[#allocation8 + $0x24] ss:$8 sps:$4 sm:$0xff]   ;;  %v1800_v4 = vld [vmem:[#allocation8 + $0x30] ss:$8 sps:$4 sm:$0xff]  }
 0x217   :  { %v466_v14 = vmul.f32 %v458_v2, %v448_v8  ;;  %v450_v15 = vmax.f32 %v444_v9, 0.0  ;;  %v1803_v6 = vld [vmem:[#allocation8 + $0x40] ss:$8 sps:$4 sm:$0xff]   ;;  %v1806_v8 = vld [vmem:[#allocation8 + $0x50] ss:$8 sps:$4 sm:$0xff]  }
 0x218   :  { %v467_v16 = vmul.f32 %v458_v2, %v449_v11  ;;  %v451_v17 = vmax.f32 %v446_v12, 0.0  ;;  %v1797_v2 = vld [vmem:[#allocation8 + $0x20] ss:$8 sps:$4 sm:$0xff]   ;;  %v1811_v9 = vld [vmem:[#allocation8 + $0x64] ss:$8 sps:$4 sm:$0xff]  }
 0x219   :  { %v470_v18 = vrot.slane %v466_v14, 4  ;;  %v468_v19 = vmul.f32 %v465_v13, %v450_v15  ;;  %v1809_v10 = vld [vmem:[#allocation8 + $0x60] ss:$8 sps:$4 sm:$0xff]   ;;  %v1814_v11 = vld [vmem:[#allocation8 + $0x74] ss:$8 sps:$4 sm:$0xff]  }
 0x21a   :  { %v476_v20 = vrot.slane %v467_v16, 4  ;;  %v469_v21 = vmul.f32 %v465_v13, %v451_v17  ;;  %v1812_v12 = vld [vmem:[#allocation8 + $0x70] ss:$8 sps:$4 sm:$0xff]   ;;  %v1817_v13 = vld [vmem:[#allocation8 + $0x84] ss:$8 sps:$4 sm:$0xff]  }
 0x21b   :  { %v471_v22 = vadd.f32 %v470_v18, %v466_v14  ;;  %v482_v23 = vrot.slane %v468_v19, 4  ;;  %v1815_v14 = vld [vmem:[#allocation8 + $0x80] ss:$8 sps:$4 sm:$0xff]   ;;  %v1820_v15 = vld [vmem:[#allocation8 + $0x94] ss:$8 sps:$4 sm:$0xff]  }
 0x21c   :  { %v477_v24 = vadd.f32 %v476_v20, %v467_v16  ;;  %v488_v25 = vrot.slane %v469_v21, 4  ;;  %v1818_v16 = vld [vmem:[#allocation8 + $0x90] ss:$8 sps:$4 sm:$0xff]   ;;  %v1823_v17 = vld [vmem:[#allocation8 + $0xa4] ss:$8 sps:$4 sm:$0xff]  }
 0x21d   :  { %v472_v26 = vrot.slane %v471_v22, 2  ;;  %v483_v27 = vadd.f32 %v482_v23, %v468_v19  ;;  %v1821_v18 = vld [vmem:[#allocation8 + $0xa0] ss:$8 sps:$4 sm:$0xff]   ;;  %v1826_v19 = vld [vmem:[#allocation8 + $0xb4] ss:$8 sps:$4 sm:$0xff]  }
 0x21e   :  { %v478_v28 = vrot.slane %v477_v24, 2  ;;  %v489_v29 = vadd.f32 %v488_v25, %v469_v21  ;;  %v1824_v20 = vld [vmem:[#allocation8 + $0xb0] ss:$8 sps:$4 sm:$0xff]   ;;  %v1829_v21 = vld [vmem:[#allocation8 + $0xc4] ss:$8 sps:$4 sm:$0xff]  }
 0x21f   :  { %v473_v30 = vadd.f32 %v472_v26, %v471_v22  ;;  %v484_v31 = vrot.slane %v483_v27, 2  ;;  %v1827_v22 = vld [vmem:[#allocation8 + $0xc0] ss:$8 sps:$4 sm:$0xff]   ;;  %v1832_v23 = vld [vmem:[#allocation8 + $0xd4] ss:$8 sps:$4 sm:$0xff]  }
 0x220   :  { %v479_v32 = vadd.f32 %v478_v28, %v477_v24  ;;  %v490_v33 = vrot.slane %v489_v29, 2  ;;  %v1830_v24 = vld [vmem:[#allocation8 + $0xd0] ss:$8 sps:$4 sm:$0xff]   ;;  %v2205_v28 = vpop.xlane.xlu1 %496 }
 0x221   :  { %v474_v34 = vrot.slane %v473_v30, 1  ;;  %v485_v35 = vadd.f32 %v484_v31, %v483_v27  ;;  %v534_v25 = vld [vmem:[%s2246_s7] sm:$0x3]  ;;  %vm1439_vm4 = vcmp.gt.f32.partialorder %v2205_v28, 0.0 }
 0x222   :  { %v480_v36 = vrot.slane %v479_v32, 1  ;;  %v491_v37 = vadd.f32 %v490_v33, %v489_v29  ;;  %v539_v26 = vrot.slane %v534_v25, %v2174_v40  ;;  %v543_v27 = vrot.slane %v534_v25, %v2181_v44 }
 0x223   :  { %v475_v38 = vadd.f32 %v474_v34, %v473_v30  ;;  %v486_v39 = vrot.slane %v485_v35, 1 }
 0x224   :  { %v481_v42 = vadd.f32 %v480_v36, %v479_v32  ;;  %v492_v41 = vrot.slane %v491_v37, 1  ;;  %v546_v29 = vmul.f32 %v539_v26, %v2205_v28  ;;  %v547_v30 = vmul.f32 %v543_v27, %v2205_v28 }
 0x225   :  { %v498_v43 = vpack.c.bf16 %v475_v38, %v475_v38  ;;  %v487_v45 = vadd.f32 %v486_v39, %v485_v35  ;;  %v1835_v39 = vld [vmem:[#allocation8 + $0xe4] ss:$8 sps:$4 sm:$0xff]  }
 0x226   :  { %v499_v46 = vpack.c.bf16 %v481_v42, %v481_v42  ;;  %v493_v47 = vadd.f32 %v492_v41, %v491_v37  ;;  %v1833_v42 = vld [vmem:[#allocation8 + $0xe0] ss:$8 sps:$4 sm:$0xff]   ;;  %v1838_v41 = vld [vmem:[#allocation8 + $0xf4] ss:$8 sps:$4 sm:$0xff]  }
 0x227   :  { %v500_v48 = vpack.c.bf16 %v487_v45, %v487_v45  ;;  %v552_v50 = vunpack.c.l.b16 %v498_v43  ;;  %v1836_v43 = vld [vmem:[#allocation8 + $0xf0] ss:$8 sps:$4 sm:$0xff]   ;;  %v1839_v45 = vld [vmem:[#allocation10 + $0x40] sm:$0xff]  }
 0x228   :  { %v501_v49 = vpack.c.bf16 %v493_v47, %v493_v47  ;;  %v553_v53 = vunpack.c.l.b16 %v499_v46  ;;  %v1840_v46 = vld [vmem:[#allocation10] sm:$0xff]   ;;  %v1841_v47 = vld [vmem:[#allocation10 + $0x48] sm:$0xff]   ;;  %1611 = vmatprep.subr.bf16.mxu1 %v1839_v45 }
 0x229   :  { %v554_v51 = vunpack.c.l.b16 %v500_v48  ;;  %v1842_v48 = vld [vmem:[#allocation10 + $0x8] sm:$0xff]  }
 0x22a   :  { %v555_v52 = vunpack.c.l.b16 %v501_v49  ;;  %v1843_v49 = vld [vmem:[#allocation10 + $0x50] sm:$0xff]  }
 0x22b   :  { %v557_v54 = vsel %vm556_vm3, %v554_v51, %v552_v50  ;;  %v1844_v50 = vld [vmem:[#allocation10 + $0x10] sm:$0xff]   ;;  %v1845_v51 = vld [vmem:[#allocation10 + $0x58] sm:$0xff]  }
 0x22c   :  { %v558_v55 = vsel %vm556_vm3, %v555_v52, %v553_v53  ;;  %v559_v57 = vpack.c.b16 %v557_v54, %v557_v54  ;;  %v1846_v52 = vld [vmem:[#allocation10 + $0x18] sm:$0xff]   ;;  %v1847_v53 = vld [vmem:[#allocation10 + $0x60] sm:$0xff]  }
 0x22d   :  { %v560_v56 = vpack.c.b16 %v558_v55, %v558_v55  ;;  %v1848_v54 = vld [vmem:[#allocation10 + $0x20] sm:$0xff]   ;;  %v1849_v55 = vld [vmem:[#allocation10 + $0x68] sm:$0xff]  }
 0x22f   :  { %755 = vmatprep.mubr.bf16.mxu0 %v560_v56  ;;  %v1850_v56 = vld [vmem:[#allocation10 + $0x28] sm:$0xff]  }
 0x230   :  { %756 = vmatmul.mubr.bf16.vlgmr.msra.gmra.mrb[4].mxu0 %v559_v57  ;;  %v798_v57 = vld [vmem:[%s2248_s9] sm:$0x3] }
 0x231   :  { %1220 = vmatpush1.bf16.msra.mxu0 %v1791_v60  ;;  %v803_v58 = vrot.slane %v798_v57, %v2174_v40  ;;  %v807_v59 = vrot.slane %v798_v57, %v2181_v44 }
 0x232   :  { %1221 = vmatprep.subr.bf16.mxu0 %v1796_v62 }
 0x235   :  { %1222 = vmatpush1.bf16.msra.mxu0 %v1794_v63 }
 0x236   :  { %1223 = vmatprep.subr.bf16.mxu0 %v1799_v1 }
 0x239   :  { %1224 = vmatpush1.bf16.msra.mxu0 %v1797_v2 }
 0x23a   :  { %1225 = vmatprep.subr.bf16.mxu0 %v1802_v3 }
 0x23d   :  { %1226 = vmatpush1.bf16.msra.mxu0 %v1800_v4 }
 0x23e   :  { %1227 = vmatprep.subr.bf16.mxu0 %v1805_v5 }
 0x241   :  { %1228 = vmatpush1.bf16.msra.mxu0 %v1803_v6 }
 0x242   :  { %1229 = vmatprep.subr.bf16.mxu0 %v1808_v7  ;;  %v1851_v7 = vld [vmem:[#allocation10 + $0x70] sm:$0xff]  }
 0x245   :  { %1230 = vmatpush1.bf16.msra.mxu0 %v1806_v8  ;;  %v1852_v8 = vld [vmem:[#allocation10 + $0x30] sm:$0xff]  }
 0x246   :  { %1231 = vmatprep.subr.bf16.mxu0 %v1811_v9  ;;  %v1853_v9 = vld [vmem:[#allocation10 + $0x78] sm:$0xff]  }
 0x249   :  { %1232 = vmatpush1.bf16.msra.mxu0 %v1809_v10  ;;  %v1854_v10 = vld [vmem:[#allocation10 + $0x38] sm:$0xff]  }
 0x24a   :  { %1233 = vmatprep.subr.bf16.mxu0 %v1814_v11  ;;  %v1047_v11 = vld [vmem:[%s2250_s11] sm:$0x3] }
 0x24d   :  { %1234 = vmatpush1.bf16.msra.mxu0 %v1812_v12  ;;  %v1052_v12 = vrot.slane %v1047_v11, %v2174_v40  ;;  %v1594_v40 = vld [vmem:[%s2252_s13] ss:$0 sm:$0xff] }
 0x24e   :  { %1235 = vmatprep.subr.bf16.mxu0 %v1817_v13  ;;  %v1056_v13 = vrot.slane %v1047_v11, %v2181_v44 }
 0x251   :  { %1236 = vmatpush1.bf16.msra.mxu0 %v1815_v14 }
 0x252   :  { %1237 = vmatprep.subr.bf16.mxu0 %v1820_v15 }
 0x255   :  { %1238 = vmatpush1.bf16.msra.mxu0 %v1818_v16 }
 0x256   :  { %1239 = vmatprep.subr.bf16.mxu0 %v1823_v17 }
 0x259   :  { %1240 = vmatpush1.bf16.msra.mxu0 %v1821_v18 }
 0x25a   :  { %1241 = vmatprep.subr.bf16.mxu0 %v1826_v19 }
 0x25d   :  { %1242 = vmatpush1.bf16.msra.mxu0 %v1824_v20 }
 0x25e   :  { %1243 = vmatprep.subr.bf16.mxu0 %v1829_v21 }
 0x261   :  { %1244 = vmatpush1.bf16.msra.mxu0 %v1827_v22 }
 0x262   :  { %1245 = vmatprep.subr.bf16.mxu0 %v1832_v23 }
 0x265   :  { %1246 = vmatpush1.bf16.msra.mxu0 %v1830_v24 }
 0x266   :  { %1247 = vmatprep.subr.bf16.mxu0 %v1835_v39 }
 0x269   :  { %1248 = vmatpush1.bf16.msra.mxu0 %v1833_v42 }
 0x26a   :  { %1249 = vmatprep.subr.bf16.mxu0 %v1838_v41 }
 0x26d   :  { %1250 = vmatpush1.bf16.msra.mxu0 %v1836_v43 }
 0x303   :  { %v757_v31 = vpop.f32.mrb[4].mxu0 }
 0x304   :  { %v758_v32 = vadd.f32 %v757_v31, %v546_v29  ;;  %v759_v33 = vpop.f32.mrb[5].mxu0 }
 0x305   :  { %v760_v34 = vadd.f32 %v759_v33, %v547_v30  ;;  %v761_v35 = vpop.f32.mrb[6].mxu0 }
 0x306   :  { %v762_v36 = vpop.f32.mrb[7].mxu0  ;;  %v764_v38 = vpack.c.bf16 %v758_v32, %v758_v32 }
 0x307   :  { %v765_v37 = vpack.c.bf16 %v760_v34, %v760_v34 }
 0x309   :  { %1002 = vmatprep.mubr.bf16.mxu1 %v765_v37 }
 0x30a   :  { %1003 = vmatmul.mubr.bf16.vlgmr.msra.gmra.mrb[4].mxu1 %v764_v38 }
 0x30b   :  { %1612 = vmatpush3.bf16.msra.mxu1 %v1840_v46 }
 0x30c   :  { %1613 = vmatprep.subr.bf16.mxu1 %v1841_v47 }
 0x30f   :  { %1614 = vmatpush3.bf16.msra.mxu1 %v1842_v48 }
 0x310   :  { %1615 = vmatprep.subr.bf16.mxu1 %v1843_v49 }
 0x313   :  { %1616 = vmatpush3.bf16.msra.mxu1 %v1844_v50 }
 0x314   :  { %1617 = vmatprep.subr.bf16.mxu1 %v1845_v51 }
 0x317   :  { %1618 = vmatpush3.bf16.msra.mxu1 %v1846_v52 }
 0x318   :  { %1619 = vmatprep.subr.bf16.mxu1 %v1847_v53 }
 0x31b   :  { %1620 = vmatpush3.bf16.msra.mxu1 %v1848_v54 }
 0x31c   :  { %1621 = vmatprep.subr.bf16.mxu1 %v1849_v55 }
 0x31f   :  { %1622 = vmatpush3.bf16.msra.mxu1 %v1850_v56 }
 0x320   :  { %1623 = vmatprep.subr.bf16.mxu1 %v1851_v7 }
 0x323   :  { %1624 = vmatpush3.bf16.msra.mxu1 %v1852_v8 }
 0x324   :  { %1625 = vmatprep.subr.bf16.mxu1 %v1853_v9 }
 0x327   :  { %1626 = vmatpush3.bf16.msra.mxu1 %v1854_v10 }
 0x3dd   :  { %v1004_v60 = vpop.f32.mrb[4].mxu1 }
 0x3de   :  { %v1005_v61 = vadd.f32 %v1004_v60, %v803_v58  ;;  %v1006_v62 = vpop.f32.mrb[5].mxu1 }
 0x3df   :  { %v1007_v63 = vadd.f32 %v1006_v62, %v807_v59  ;;  %v1008_v1 = vpop.f32.mrb[6].mxu1 }
 0x3e0   :  { %v1011_v2 = vpack.c.bf16 %v1005_v61, %v1005_v61  ;;  %v1009_v3 = vpop.f32.mrb[7].mxu1 }
 0x3e1   :  { %v1012_v4 = vpack.c.bf16 %v1007_v63, %v1007_v63 }
 0x3e2   :  { %v1013_v6 = vmax.bf16 %v2004_v0, %v1011_v2 }
 0x3e3   :  { %v1014_v5 = vmax.bf16 %v2004_v0, %v1012_v4 }
 0x3e5   :  { %1251 = vmatprep.mubr.bf16.mxu0 %v1014_v5 }
 0x3e6   :  { %1252 = vmatmul.mubr.bf16.vlgmr.msra.gmra.mrb[8].mxu0 %v1013_v6 }
 0x4b9   :  { %v1253_v14 = vpop.f32.mrb[8].mxu0 }
 0x4ba   :  { %v1254_v15 = vadd.f32 %v1253_v14, %v1052_v12  ;;  %v1255_v16 = vpop.f32.mrb[9].mxu0 }
 0x4bb   :  { %v1256_v17 = vadd.f32 %v1255_v16, %v1056_v13  ;;  %v1257_v18 = vpop.f32.mrb[10].mxu0 }
 0x4bc   :  { %v1260_v19 = vpack.c.bf16 %v1254_v15, %v1254_v15  ;;  %v1258_v20 = vpop.f32.mrb[11].mxu0 }
 0x4bd   :  { %v1261_v21 = vpack.c.bf16 %v1256_v17, %v1256_v17 }
 0x4be   :  { %v1262_v23 = vmax.bf16 %v2004_v0, %v1260_v19 }
 0x4bf   :  { %v1263_v22 = vmax.bf16 %v2004_v0, %v1261_v21 }
 0x4c1   :  { %1431 = vmatprep.mubr.bf16.mxu1 %v1263_v22 }
 0x4c2   :  { %1432 = vmatmul.mubr.bf16.vlgmr.msra.gmra.mrb[8].mxu1 %v1262_v23 }
 0x595   :  { %v1627_v24 = vpop.f32.mrb[8].mxu1 }
 0x596   :  { %v1628_v44 = vpop.f32.mrb[9].mxu1 }
 0x597   :  { %v1629_v25 = vadd.f32 %v1628_v44, %v1627_v24  ;;  %v1630_v26 = vpop.f32.mrb[10].mxu1 }
 0x598   :  { %v1631_v27 = vpop.f32.mrb[11].mxu1 }
 0x599   :  { %v1434_v29 = vadd.f32 %v1629_v25, %v1594_v40 }
 0x59b   :  { %v1442_v30 = vsel %vm1439_vm4, %v1434_v29, 0.0 }
 0x59c   :  { %1443 = vst [vmem:[#allocation11] sm:$0x3] %v1442_v30 }
 0x59d   :  { %1976 = shalt.err (!%p1973_p2)
}
 0x59e   :  { %s1977_s30 = scalar_lea.hbm %s2253_s14, 32 }
 0x59f   :  { %p1978_p3 = scmp.ne.s32.totalorder %s2253_s14, %s1977_s30  ;;  %p1981_p4 = scmp.lt.u32.totalorder %s1977_s30, %s2253_s14 }
 0x5a1   :  { %p1983_p5 = pnand %p1981_p4, %p1978_p3 }
 0x5a3   :  { %1986 = shalt.err (!%p1983_p5)
}
 0x5a4   :  { %1453 = dma.vmem_to_hbm [thread:$0]  %s1451_s16, 32, %s2253_s14, [#allocation4]  }
 0x5a5   :  { %1993 = dma.done.wait [#allocation4], 32  }
 0x5a6   :  { %1994 = vsyncadd [#allocation4], 4294967264 }
 0x5a7   :  { %1457 = vsyncpa [#allocation3], 1 }
 0x5a8   :  { %1458 = vsyncpa [#allocation6], 1 }
 0x5a9   :  { %1459 = vsyncpa [#allocation9], 1 }
 0x5aa   :  { %1460 = vsyncpa [#allocation4], 1 }

</bundles_post_ra>
